<compile_context>
chip_gen: v6e
topology: v6e:2x2x1
jax: 0.10.0
libtpu: 0.0.40
codegen_flags: <defaults>
</compile_context>

<pallas_src>
import jax
import jax.numpy as jnp
from jax.experimental import pallas as pl
from jax.experimental.pallas import tpu as pltpu


def _round_up(x, m):
    return (x + m - 1) // m * m


def _pick_time_tile(T, target=128):
    """Largest time-tile <= target that divides T (no time padding: extra zero
    timesteps would change the LSTM state)."""
    tt = min(T, target)
    while T % tt:
        tt -= 1
    return tt


def lstm_fc_kernel(x_ref, w_ih_ref, w_hh_ref, b_ref, w_fc_ref, b_fc_ref,
                   out_ref, pre_ref, h_ref, c_ref):
    """One (batch-chunk, time-tile) grid step.

    x_ref   : (Tt, Bt, I)   f32   streamed input tile (time-major)
    w_ih_ref: (I, 4*Hp)     bf16  input->gates weight (transposed, gate-padded)
    w_hh_ref: (Hp, 4*Hp)    bf16  hidden->gates weight (transposed, gate-padded)
    b_ref   : (1, 4*Hp)     f32   b_ih + b_hh (gate-padded)
    w_fc_ref: (Hp, Op)      bf16  final linear weight (transposed, padded)
    b_fc_ref: (1, Op)       f32   final linear bias (padded)
    out_ref : (Bt, Op)      f32   fc1(h_T), written only on the last time-tile
    pre_ref : (Tt*Bt, 4*Hp) f32   scratch: pre-gates for this tile
    h_ref/c_ref: (Bt, Hp)   f32   scratch: recurrent state carried across tiles
    """
    Tt, Bt, I = x_ref.shape
    Hp = w_hh_ref.shape[0]
    t = pl.program_id(1)

    @pl.when(t == 0)
    def _init():
        h_ref[...] = jnp.zeros_like(h_ref)
        c_ref[...] = jnp.zeros_like(c_ref)

    # Fused input projection for the whole tile: one MXU matmul (off the serial
    # recurrence path), bf16 operands, f32 accumulate + f32 bias.
    x2 = x_ref[...].reshape(Tt * Bt, I).astype(jnp.bfloat16)
    pre_ref[...] = (jnp.dot(x2, w_ih_ref[...], preferred_element_type=jnp.float32)
                    + b_ref[...])

    def sigmoid(z):
        # 1 EUP push (tanh) instead of exp + reciprocal; exact sigmoid, and
        # 0.5*tanh(0)+0.5 = 0.5 keeps the zero-padding invariant exact.
        return 0.5 * jnp.tanh(0.5 * z) + 0.5

    def step(i, carry):
        h, c = carry
        row = pl.multiple_of(i * Bt, 8)
        gates = pre_ref[pl.ds(row, Bt), :] + jnp.dot(
            h.astype(jnp.bfloat16), w_hh_ref[...],
            preferred_element_type=jnp.float32)                       # (Bt, 4Hp)
        i_g = sigmoid(gates[:, 0 * Hp:1 * Hp])
        f_g = sigmoid(gates[:, 1 * Hp:2 * Hp])
        g_g = jnp.tanh(gates[:, 2 * Hp:3 * Hp])
        o_g = sigmoid(gates[:, 3 * Hp:4 * Hp])
        c = f_g * c + i_g * g_g
        h = o_g * jnp.tanh(c)
        return (h, c)

    h, c = jax.lax.fori_loop(0, Tt, step, (h_ref[...], c_ref[...]),
                             unroll=min(8, Tt))
    h_ref[...] = h
    c_ref[...] = c

    @pl.when(t == pl.num_programs(1) - 1)
    def _finalize():
        out_ref[...] = (jnp.dot(h.astype(jnp.bfloat16), w_fc_ref[...],
                                preferred_element_type=jnp.float32)
                        + b_fc_ref[...]).astype(out_ref.dtype)


def _vmem_limit_bytes(Tt, Bt, I, Hp, Op):
    x_tile = Tt * Bt * I * 4
    weights = (I * 4 * Hp + Hp * 4 * Hp + Hp * Op) * 2 + (4 * Hp + Op) * 4
    pre_sc = Tt * Bt * 4 * Hp * 4
    hc_sc = 2 * Bt * Hp * 4
    out_blk = Bt * Op * 4
    total = 2 * x_tile + 2 * weights + pre_sc + hc_sc + 2 * out_blk
    # explicit limit with headroom; stays well under v7x's 64 MiB physical VMEM
    return min(max(2 * total, 16 * 1024 * 1024), 48 * 1024 * 1024)


@jax.jit
def rnn_forward(x, w_ih, w_hh, b_ih, b_hh, w_fc, b_fc):
    """x: (B, T, I) batch_first; PyTorch-shaped params (gate order i,f,g,o):
       w_ih (4H, I), w_hh (4H, H), b_ih/b_hh (4H,), w_fc (O, H), b_fc (O,).
       Returns (B, O) == fc1(lstm(x)[0][:, -1, :])."""
    B, T, I = x.shape
    H = w_hh.shape[1]
    O = w_fc.shape[0]
    Hp = _round_up(max(H, 1), 128)
    Op = _round_up(max(O, 1), 128)
    Bp = _round_up(max(B, 1), 8)          # sublane-aligned batch
    f32, bf16 = jnp.float32, jnp.bfloat16

    Tt = _pick_time_tile(T, 128)
    nt = T // Tt
    nb = 1                                 # TODO(synk): nb=2 on v7x (dual TC)
    Bt = Bp // nb

    # --- per-gate zero padding so each gate occupies a lane-aligned Hp slab ---
    w_ih_p = jnp.zeros((4, Hp, I), f32).at[:, :H, :].set(
        w_ih.reshape(4, H, I).astype(f32))
    w_hh_p = jnp.zeros((4, Hp, Hp), f32).at[:, :H, :H].set(
        w_hh.reshape(4, H, H).astype(f32))
    b_p = jnp.zeros((4, Hp), f32).at[:, :H].set(
        (b_ih + b_hh).reshape(4, H).astype(f32))

    w_ih_t = jnp.transpose(w_ih_p.reshape(4 * Hp, I)).astype(bf16)    # (I, 4Hp)
    w_hh_t = jnp.transpose(w_hh_p.reshape(4 * Hp, Hp)).astype(bf16)   # (Hp, 4Hp)
    b_row = b_p.reshape(1, 4 * Hp)                                    # (1, 4Hp) f32

    w_fc_t = jnp.transpose(
        jnp.zeros((Op, Hp), f32).at[:O, :H].set(w_fc.astype(f32))).astype(bf16)
    b_fc_p = jnp.zeros((1, Op), f32).at[0, :O].set(b_fc.astype(f32))  # (1, Op)

    # time-major, batch padded to Bp (padded rows are sliced off afterwards)
    x_tbi = jnp.zeros((T, Bp, I), f32).at[:, :B, :].set(
        jnp.transpose(x, (1, 0, 2)).astype(f32))

    out_pad = pl.pallas_call(
        lstm_fc_kernel,
        out_shape=jax.ShapeDtypeStruct((Bp, Op), f32),
        grid_spec=pltpu.PrefetchScalarGridSpec(
            num_scalar_prefetch=0,
            grid=(nb, nt),
            in_specs=[
                pl.BlockSpec((Tt, Bt, I), lambda b, t: (t, b, 0)),     # streamed x
                pl.BlockSpec((I, 4 * Hp), lambda b, t: (0, 0)),        # resident
                pl.BlockSpec((Hp, 4 * Hp), lambda b, t: (0, 0)),       # resident
                pl.BlockSpec((1, 4 * Hp), lambda b, t: (0, 0)),        # resident
                pl.BlockSpec((Hp, Op), lambda b, t: (0, 0)),           # resident
                pl.BlockSpec((1, Op), lambda b, t: (0, 0)),            # resident
            ],
            out_specs=pl.BlockSpec((Bt, Op), lambda b, t: (b, 0)),
            scratch_shapes=[
                pltpu.VMEM((Tt * Bt, 4 * Hp), f32),   # per-tile pre-gates
                pltpu.VMEM((Bt, Hp), f32),            # h carried across tiles
                pltpu.VMEM((Bt, Hp), f32),            # c carried across tiles
            ],
        ),
        compiler_params=pltpu.CompilerParams(
            dimension_semantics=("parallel", "arbitrary"),
            vmem_limit_bytes=_vmem_limit_bytes(Tt, Bt, I, Hp, Op),
        ),
    )(x_tbi, w_ih_t, w_hh_t, b_row, w_fc_t, b_fc_p)

    return out_pad[:B, :O]


def reference_forward(x, w_ih, w_hh, b_ih, b_hh, w_fc, b_fc):
    """Pure-JAX f32 reference replicating nn.LSTM (batch_first) + fc1 on last step."""
    B, T, I = x.shape
    H = w_hh.shape[1]
    h = jnp.zeros((B, H), jnp.float32)
    c = jnp.zeros((B, H), jnp.float32)

    def step(carry, x_t):
        h, c = carry
        gates = x_t @ w_ih.T + b_ih + h @ w_hh.T + b_hh
        i = jax.nn.sigmoid(gates[:, 0:H])
        f = jax.nn.sigmoid(gates[:, H:2 * H])
        g = jnp.tanh(gates[:, 2 * H:3 * H])
        o = jax.nn.sigmoid(gates[:, 3 * H:4 * H])
        c = f * c + i * g
        h = o * jnp.tanh(c)
        return (h, c), None

    (h, c), _ = jax.lax.scan(step, (h, c), jnp.transpose(x, (1, 0, 2)))
    return h @ w_fc.T + b_fc


if __name__ == "__main__":
    # Small shapes consistent with the module's forward:
    # x: (batch, seq, input_size); LSTM hidden=32; fc out = output_len*input_size
    B, T, I = 4, 8, 1
    H = 32
    OUTPUT_LEN = 3
    O = OUTPUT_LEN * I

    key = jax.random.PRNGKey(0)
    ks = jax.random.split(key, 7)
    scale = 1.0 / jnp.sqrt(H)
    # PyTorch parameter shapes (gate order i, f, g, o), deterministic init.
    w_ih = jax.random.uniform(ks[0], (4 * H, I), jnp.float32, -scale, scale)
    w_hh = jax.random.uniform(ks[1], (4 * H, H), jnp.float32, -scale, scale)
    b_ih = jax.random.uniform(ks[2], (4 * H,), jnp.float32, -scale, scale)
    b_hh = jax.random.uniform(ks[3], (4 * H,), jnp.float32, -scale, scale)
    w_fc = jax.random.uniform(ks[4], (O, H), jnp.float32, -scale, scale)
    b_fc = jax.random.uniform(ks[5], (O,), jnp.float32, -scale, scale)

    x = jax.random.normal(ks[6], (B, T, I), jnp.float32)

    out = rnn_forward(x, w_ih, w_hh, b_ih, b_hh, w_fc, b_fc)
    out = jax.block_until_ready(out)

    ref = reference_forward(x, w_ih, w_hh, b_ih, b_hh, w_fc, b_fc)
    assert out.shape == (B, O)
    # bf16 MXU operands (f32 accumulate / f32 state) => relaxed tolerance vs the
    # pure-f32 reference; observed error is ~1e-3 at these shapes.
    assert jnp.allclose(out, ref, atol=2e-2, rtol=2e-2), "mismatch vs reference"

    print("KERNEL_OK")
</pallas_src>

<mosaic_0001>
module attributes {stable_mosaic.version = 11 : i64} {
  func.func @lstm_fc_kernel(%arg0: i32, %arg1: i32, %arg2: memref<8x8x1xf32, #tpu.memory_space<vmem>>, %arg3: memref<1x512xbf16, #tpu.memory_space<vmem>>, %arg4: memref<128x512xbf16, #tpu.memory_space<vmem>>, %arg5: memref<1x512xf32, #tpu.memory_space<vmem>>, %arg6: memref<128x128xbf16, #tpu.memory_space<vmem>>, %arg7: memref<1x128xf32, #tpu.memory_space<vmem>>, %arg8: memref<8x128xf32, #tpu.memory_space<vmem>>, %arg9: memref<64x512xf32, #tpu.memory_space<vmem>>, %arg10: memref<8x128xf32, #tpu.memory_space<vmem>>, %arg11: memref<8x128xf32, #tpu.memory_space<vmem>>) attributes {dimension_semantics = [#tpu.dimension_semantics<parallel>, #tpu.dimension_semantics<arbitrary>], iteration_bounds = array<i64: 1, 1>, scalar_prefetch = 0 : i64, scratch_operands = 3 : i64, tpu.core_type = #tpu.core_type<tc>, window_params = [{transform_indices = @transform_0, window_bounds = array<i64: 8, 8, 1>}, {pipeline_mode = #tpu.pipeline_mode<synchronous>, transform_indices = @transform_1, window_bounds = array<i64: 1, 512>}, {pipeline_mode = #tpu.pipeline_mode<synchronous>, transform_indices = @transform_2, window_bounds = array<i64: 128, 512>}, {pipeline_mode = #tpu.pipeline_mode<synchronous>, transform_indices = @transform_3, window_bounds = array<i64: 1, 512>}, {pipeline_mode = #tpu.pipeline_mode<synchronous>, transform_indices = @transform_4, window_bounds = array<i64: 128, 128>}, {pipeline_mode = #tpu.pipeline_mode<synchronous>, transform_indices = @transform_5, window_bounds = array<i64: 1, 128>}, {transform_indices = @transform_6, window_bounds = array<i64: 8, 128>}]} {
    %c0_i32 = arith.constant 0 : i32
    %0 = arith.cmpi eq, %arg1, %c0_i32 : i32
    %1 = arith.extui %0 : i1 to i32
    %c0_i32_0 = arith.constant 0 : i32
    %2 = arith.cmpi ne, %1, %c0_i32_0 : i32
    scf.if %2 {
      %cst_132 = arith.constant 0.000000e+00 : f32
      %331 = vector.broadcast %cst_132 : f32 to vector<8x128xf32>
      %c0_133 = arith.constant 0 : index
      %c0_134 = arith.constant 0 : index
      %332 = vector.load %arg10[%c0_133, %c0_134] : memref<8x128xf32, #tpu.memory_space<vmem>>, vector<8x128xf32>
      tpu.vector_store %arg10[%c0_133, %c0_134], %331 {strides = array<i32>} : memref<8x128xf32, #tpu.memory_space<vmem>>, vector<8x128xf32>,
      %cst_135 = arith.constant 0.000000e+00 : f32
      %333 = vector.broadcast %cst_135 : f32 to vector<8x128xf32>
      %c0_136 = arith.constant 0 : index
      %c0_137 = arith.constant 0 : index
      %334 = vector.load %arg11[%c0_136, %c0_137] : memref<8x128xf32, #tpu.memory_space<vmem>>, vector<8x128xf32>
      tpu.vector_store %arg11[%c0_136, %c0_137], %333 {strides = array<i32>} : memref<8x128xf32, #tpu.memory_space<vmem>>, vector<8x128xf32>,
    } else {
    }
    %c0 = arith.constant 0 : index
    %c0_1 = arith.constant 0 : index
    %c0_2 = arith.constant 0 : index
    %3 = vector.load %arg2[%c0, %c0_1, %c0_2] : memref<8x8x1xf32, #tpu.memory_space<vmem>>, vector<8x8x1xf32>
    %4 = vector.shape_cast %3 : vector<8x8x1xf32> to vector<64x1xf32>
    %5 = arith.truncf %4 : vector<64x1xf32> to vector<64x1xbf16>
    %c0_3 = arith.constant 0 : index
    %c0_4 = arith.constant 0 : index
    %6 = vector.load %arg3[%c0_3, %c0_4] : memref<1x512xbf16, #tpu.memory_space<vmem>>, vector<1x512xbf16>
    %cst = arith.constant dense<0.000000e+00> : vector<64x512xf32>
    %7 = tpu.matmul %5, %6, %cst {dimension_numbers = #tpu.dot_dimension_numbers<[1], [0], [0], [1], [0, 0, 1, 1], [], []>} : vector<64x1xbf16>, vector<1x512xbf16>, vector<64x512xf32> -> vector<64x512xf32>
    %c0_5 = arith.constant 0 : index
    %c0_6 = arith.constant 0 : index
    %8 = vector.load %arg5[%c0_5, %c0_6] : memref<1x512xf32, #tpu.memory_space<vmem>>, vector<1x512xf32>
    %9 = vector.broadcast %8 : vector<1x512xf32> to vector<64x512xf32>
    %10 = arith.addf %7, %9 : vector<64x512xf32>
    %c0_7 = arith.constant 0 : index
    %c0_8 = arith.constant 0 : index
    %11 = vector.load %arg9[%c0_7, %c0_8] : memref<64x512xf32, #tpu.memory_space<vmem>>, vector<64x512xf32>
    tpu.vector_store %arg9[%c0_7, %c0_8], %10 {strides = array<i32>} : memref<64x512xf32, #tpu.memory_space<vmem>>, vector<64x512xf32>,
    %c0_9 = arith.constant 0 : index
    %c0_10 = arith.constant 0 : index
    %12 = vector.load %arg10[%c0_9, %c0_10] : memref<8x128xf32, #tpu.memory_space<vmem>>, vector<8x128xf32>
    %c0_11 = arith.constant 0 : index
    %c0_12 = arith.constant 0 : index
    %13 = vector.load %arg11[%c0_11, %c0_12] : memref<8x128xf32, #tpu.memory_space<vmem>>, vector<8x128xf32>
    %c0_i32_13 = arith.constant 0 : i32
    %c8_i32 = arith.constant 8 : i32
    %14 = arith.muli %c0_i32_13, %c8_i32 : i32
    %15 = tpu.assume_multiple %14, 8 : i32
    %16 = arith.index_cast %15 : i32 to index
    %c0_14 = arith.constant 0 : index
    %17 = vector.load %arg9[%16, %c0_14] : memref<64x512xf32, #tpu.memory_space<vmem>>, vector<8x512xf32>
    %18 = arith.truncf %12 : vector<8x128xf32> to vector<8x128xbf16>
    %c0_15 = arith.constant 0 : index
    %c0_16 = arith.constant 0 : index
    %19 = vector.load %arg4[%c0_15, %c0_16] : memref<128x512xbf16, #tpu.memory_space<vmem>>, vector<128x512xbf16>
    %cst_17 = arith.constant dense<0.000000e+00> : vector<8x512xf32>
    %20 = tpu.matmul %18, %19, %cst_17 {dimension_numbers = #tpu.dot_dimension_numbers<[1], [0], [0], [1], [0, 0, 1, 1], [], []>} : vector<8x128xbf16>, vector<128x512xbf16>, vector<8x512xf32> -> vector<8x512xf32>
    %21 = arith.addf %17, %20 : vector<8x512xf32>
    %22 = vector.extract_strided_slice %21 {offsets = [0, 0], sizes = [8, 128], strides = [1, 1]} : vector<8x512xf32> to vector<8x128xf32>
    %cst_18 = arith.constant 5.000000e-01 : f32
    %23 = vector.broadcast %cst_18 : f32 to vector<8x128xf32>
    %24 = arith.mulf %23, %22 : vector<8x128xf32>
    %25 = math.tanh %24 : vector<8x128xf32>
    %cst_19 = arith.constant 5.000000e-01 : f32
    %26 = vector.broadcast %cst_19 : f32 to vector<8x128xf32>
    %27 = arith.mulf %26, %25 : vector<8x128xf32>
    %cst_20 = arith.constant 5.000000e-01 : f32
    %28 = vector.broadcast %cst_20 : f32 to vector<8x128xf32>
    %29 = arith.addf %27, %28 : vector<8x128xf32>
    %30 = vector.extract_strided_slice %21 {offsets = [0, 128], sizes = [8, 128], strides = [1, 1]} : vector<8x512xf32> to vector<8x128xf32>
    %cst_21 = arith.constant 5.000000e-01 : f32
    %31 = vector.broadcast %cst_21 : f32 to vector<8x128xf32>
    %32 = arith.mulf %31, %30 : vector<8x128xf32>
    %33 = math.tanh %32 : vector<8x128xf32>
    %cst_22 = arith.constant 5.000000e-01 : f32
    %34 = vector.broadcast %cst_22 : f32 to vector<8x128xf32>
    %35 = arith.mulf %34, %33 : vector<8x128xf32>
    %cst_23 = arith.constant 5.000000e-01 : f32
    %36 = vector.broadcast %cst_23 : f32 to vector<8x128xf32>
    %37 = arith.addf %35, %36 : vector<8x128xf32>
    %38 = vector.extract_strided_slice %21 {offsets = [0, 256], sizes = [8, 128], strides = [1, 1]} : vector<8x512xf32> to vector<8x128xf32>
    %39 = math.tanh %38 : vector<8x128xf32>
    %40 = vector.extract_strided_slice %21 {offsets = [0, 384], sizes = [8, 128], strides = [1, 1]} : vector<8x512xf32> to vector<8x128xf32>
    %cst_24 = arith.constant 5.000000e-01 : f32
    %41 = vector.broadcast %cst_24 : f32 to vector<8x128xf32>
    %42 = arith.mulf %41, %40 : vector<8x128xf32>
    %43 = math.tanh %42 : vector<8x128xf32>
    %cst_25 = arith.constant 5.000000e-01 : f32
    %44 = vector.broadcast %cst_25 : f32 to vector<8x128xf32>
    %45 = arith.mulf %44, %43 : vector<8x128xf32>
    %cst_26 = arith.constant 5.000000e-01 : f32
    %46 = vector.broadcast %cst_26 : f32 to vector<8x128xf32>
    %47 = arith.addf %45, %46 : vector<8x128xf32>
    %48 = arith.mulf %37, %13 : vector<8x128xf32>
    %49 = arith.mulf %29, %39 : vector<8x128xf32>
    %50 = arith.addf %48, %49 : vector<8x128xf32>
    %51 = math.tanh %50 : vector<8x128xf32>
    %52 = arith.mulf %47, %51 : vector<8x128xf32>
    %c1_i32 = arith.constant 1 : i32
    %c8_i32_27 = arith.constant 8 : i32
    %53 = arith.muli %c1_i32, %c8_i32_27 : i32
    %54 = tpu.assume_multiple %53, 8 : i32
    %55 = arith.index_cast %54 : i32 to index
    %c0_28 = arith.constant 0 : index
    %56 = vector.load %arg9[%55, %c0_28] : memref<64x512xf32, #tpu.memory_space<vmem>>, vector<8x512xf32>
    %57 = arith.truncf %52 : vector<8x128xf32> to vector<8x128xbf16>
    %c0_29 = arith.constant 0 : index
    %c0_30 = arith.constant 0 : index
    %58 = vector.load %arg4[%c0_29, %c0_30] : memref<128x512xbf16, #tpu.memory_space<vmem>>, vector<128x512xbf16>
    %cst_31 = arith.constant dense<0.000000e+00> : vector<8x512xf32>
    %59 = tpu.matmul %57, %58, %cst_31 {dimension_numbers = #tpu.dot_dimension_numbers<[1], [0], [0], [1], [0, 0, 1, 1], [], []>} : vector<8x128xbf16>, vector<128x512xbf16>, vector<8x512xf32> -> vector<8x512xf32>
    %60 = arith.addf %56, %59 : vector<8x512xf32>
    %61 = vector.extract_strided_slice %60 {offsets = [0, 0], sizes = [8, 128], strides = [1, 1]} : vector<8x512xf32> to vector<8x128xf32>
    %cst_32 = arith.constant 5.000000e-01 : f32
    %62 = vector.broadcast %cst_32 : f32 to vector<8x128xf32>
    %63 = arith.mulf %62, %61 : vector<8x128xf32>
    %64 = math.tanh %63 : vector<8x128xf32>
    %cst_33 = arith.constant 5.000000e-01 : f32
    %65 = vector.broadcast %cst_33 : f32 to vector<8x128xf32>
    %66 = arith.mulf %65, %64 : vector<8x128xf32>
    %cst_34 = arith.constant 5.000000e-01 : f32
    %67 = vector.broadcast %cst_34 : f32 to vector<8x128xf32>
    %68 = arith.addf %66, %67 : vector<8x128xf32>
    %69 = vector.extract_strided_slice %60 {offsets = [0, 128], sizes = [8, 128], strides = [1, 1]} : vector<8x512xf32> to vector<8x128xf32>
    %cst_35 = arith.constant 5.000000e-01 : f32
    %70 = vector.broadcast %cst_35 : f32 to vector<8x128xf32>
    %71 = arith.mulf %70, %69 : vector<8x128xf32>
    %72 = math.tanh %71 : vector<8x128xf32>
    %cst_36 = arith.constant 5.000000e-01 : f32
    %73 = vector.broadcast %cst_36 : f32 to vector<8x128xf32>
    %74 = arith.mulf %73, %72 : vector<8x128xf32>
    %cst_37 = arith.constant 5.000000e-01 : f32
    %75 = vector.broadcast %cst_37 : f32 to vector<8x128xf32>
    %76 = arith.addf %74, %75 : vector<8x128xf32>
    %77 = vector.extract_strided_slice %60 {offsets = [0, 256], sizes = [8, 128], strides = [1, 1]} : vector<8x512xf32> to vector<8x128xf32>
    %78 = math.tanh %77 : vector<8x128xf32>
    %79 = vector.extract_strided_slice %60 {offsets = [0, 384], sizes = [8, 128], strides = [1, 1]} : vector<8x512xf32> to vector<8x128xf32>
    %cst_38 = arith.constant 5.000000e-01 : f32
    %80 = vector.broadcast %cst_38 : f32 to vector<8x128xf32>
    %81 = arith.mulf %80, %79 : vector<8x128xf32>
    %82 = math.tanh %81 : vector<8x128xf32>
    %cst_39 = arith.constant 5.000000e-01 : f32
    %83 = vector.broadcast %cst_39 : f32 to vector<8x128xf32>
    %84 = arith.mulf %83, %82 : vector<8x128xf32>
    %cst_40 = arith.constant 5.000000e-01 : f32
    %85 = vector.broadcast %cst_40 : f32 to vector<8x128xf32>
    %86 = arith.addf %84, %85 : vector<8x128xf32>
    %87 = arith.mulf %76, %50 : vector<8x128xf32>
    %88 = arith.mulf %68, %78 : vector<8x128xf32>
    %89 = arith.addf %87, %88 : vector<8x128xf32>
    %90 = math.tanh %89 : vector<8x128xf32>
    %91 = arith.mulf %86, %90 : vector<8x128xf32>
    %c2_i32 = arith.constant 2 : i32
    %c8_i32_41 = arith.constant 8 : i32
    %92 = arith.muli %c2_i32, %c8_i32_41 : i32
    %93 = tpu.assume_multiple %92, 8 : i32
    %94 = arith.index_cast %93 : i32 to index
    %c0_42 = arith.constant 0 : index
    %95 = vector.load %arg9[%94, %c0_42] : memref<64x512xf32, #tpu.memory_space<vmem>>, vector<8x512xf32>
    %96 = arith.truncf %91 : vector<8x128xf32> to vector<8x128xbf16>
    %c0_43 = arith.constant 0 : index
    %c0_44 = arith.constant 0 : index
    %97 = vector.load %arg4[%c0_43, %c0_44] : memref<128x512xbf16, #tpu.memory_space<vmem>>, vector<128x512xbf16>
    %cst_45 = arith.constant dense<0.000000e+00> : vector<8x512xf32>
    %98 = tpu.matmul %96, %97, %cst_45 {dimension_numbers = #tpu.dot_dimension_numbers<[1], [0], [0], [1], [0, 0, 1, 1], [], []>} : vector<8x128xbf16>, vector<128x512xbf16>, vector<8x512xf32> -> vector<8x512xf32>
    %99 = arith.addf %95, %98 : vector<8x512xf32>
    %100 = vector.extract_strided_slice %99 {offsets = [0, 0], sizes = [8, 128], strides = [1, 1]} : vector<8x512xf32> to vector<8x128xf32>
    %cst_46 = arith.constant 5.000000e-01 : f32
    %101 = vector.broadcast %cst_46 : f32 to vector<8x128xf32>
    %102 = arith.mulf %101, %100 : vector<8x128xf32>
    %103 = math.tanh %102 : vector<8x128xf32>
    %cst_47 = arith.constant 5.000000e-01 : f32
    %104 = vector.broadcast %cst_47 : f32 to vector<8x128xf32>
    %105 = arith.mulf %104, %103 : vector<8x128xf32>
    %cst_48 = arith.constant 5.000000e-01 : f32
    %106 = vector.broadcast %cst_48 : f32 to vector<8x128xf32>
    %107 = arith.addf %105, %106 : vector<8x128xf32>
    %108 = vector.extract_strided_slice %99 {offsets = [0, 128], sizes = [8, 128], strides = [1, 1]} : vector<8x512xf32> to vector<8x128xf32>
    %cst_49 = arith.constant 5.000000e-01 : f32
    %109 = vector.broadcast %cst_49 : f32 to vector<8x128xf32>
    %110 = arith.mulf %109, %108 : vector<8x128xf32>
    %111 = math.tanh %110 : vector<8x128xf32>
    %cst_50 = arith.constant 5.000000e-01 : f32
    %112 = vector.broadcast %cst_50 : f32 to vector<8x128xf32>
    %113 = arith.mulf %112, %111 : vector<8x128xf32>
    %cst_51 = arith.constant 5.000000e-01 : f32
    %114 = vector.broadcast %cst_51 : f32 to vector<8x128xf32>
    %115 = arith.addf %113, %114 : vector<8x128xf32>
    %116 = vector.extract_strided_slice %99 {offsets = [0, 256], sizes = [8, 128], strides = [1, 1]} : vector<8x512xf32> to vector<8x128xf32>
    %117 = math.tanh %116 : vector<8x128xf32>
    %118 = vector.extract_strided_slice %99 {offsets = [0, 384], sizes = [8, 128], strides = [1, 1]} : vector<8x512xf32> to vector<8x128xf32>
    %cst_52 = arith.constant 5.000000e-01 : f32
    %119 = vector.broadcast %cst_52 : f32 to vector<8x128xf32>
    %120 = arith.mulf %119, %118 : vector<8x128xf32>
    %121 = math.tanh %120 : vector<8x128xf32>
    %cst_53 = arith.constant 5.000000e-01 : f32
    %122 = vector.broadcast %cst_53 : f32 to vector<8x128xf32>
    %123 = arith.mulf %122, %121 : vector<8x128xf32>
    %cst_54 = arith.constant 5.000000e-01 : f32
    %124 = vector.broadcast %cst_54 : f32 to vector<8x128xf32>
    %125 = arith.addf %123, %124 : vector<8x128xf32>
    %126 = arith.mulf %115, %89 : vector<8x128xf32>
    %127 = arith.mulf %107, %117 : vector<8x128xf32>
    %128 = arith.addf %126, %127 : vector<8x128xf32>
    %129 = math.tanh %128 : vector<8x128xf32>
    %130 = arith.mulf %125, %129 : vector<8x128xf32>
    %c3_i32 = arith.constant 3 : i32
    %c8_i32_55 = arith.constant 8 : i32
    %131 = arith.muli %c3_i32, %c8_i32_55 : i32
    %132 = tpu.assume_multiple %131, 8 : i32
    %133 = arith.index_cast %132 : i32 to index
    %c0_56 = arith.constant 0 : index
    %134 = vector.load %arg9[%133, %c0_56] : memref<64x512xf32, #tpu.memory_space<vmem>>, vector<8x512xf32>
    %135 = arith.truncf %130 : vector<8x128xf32> to vector<8x128xbf16>
    %c0_57 = arith.constant 0 : index
    %c0_58 = arith.constant 0 : index
    %136 = vector.load %arg4[%c0_57, %c0_58] : memref<128x512xbf16, #tpu.memory_space<vmem>>, vector<128x512xbf16>
    %cst_59 = arith.constant dense<0.000000e+00> : vector<8x512xf32>
    %137 = tpu.matmul %135, %136, %cst_59 {dimension_numbers = #tpu.dot_dimension_numbers<[1], [0], [0], [1], [0, 0, 1, 1], [], []>} : vector<8x128xbf16>, vector<128x512xbf16>, vector<8x512xf32> -> vector<8x512xf32>
    %138 = arith.addf %134, %137 : vector<8x512xf32>
    %139 = vector.extract_strided_slice %138 {offsets = [0, 0], sizes = [8, 128], strides = [1, 1]} : vector<8x512xf32> to vector<8x128xf32>
    %cst_60 = arith.constant 5.000000e-01 : f32
    %140 = vector.broadcast %cst_60 : f32 to vector<8x128xf32>
    %141 = arith.mulf %140, %139 : vector<8x128xf32>
    %142 = math.tanh %141 : vector<8x128xf32>
    %cst_61 = arith.constant 5.000000e-01 : f32
    %143 = vector.broadcast %cst_61 : f32 to vector<8x128xf32>
    %144 = arith.mulf %143, %142 : vector<8x128xf32>
    %cst_62 = arith.constant 5.000000e-01 : f32
    %145 = vector.broadcast %cst_62 : f32 to vector<8x128xf32>
    %146 = arith.addf %144, %145 : vector<8x128xf32>
    %147 = vector.extract_strided_slice %138 {offsets = [0, 128], sizes = [8, 128], strides = [1, 1]} : vector<8x512xf32> to vector<8x128xf32>
    %cst_63 = arith.constant 5.000000e-01 : f32
    %148 = vector.broadcast %cst_63 : f32 to vector<8x128xf32>
    %149 = arith.mulf %148, %147 : vector<8x128xf32>
    %150 = math.tanh %149 : vector<8x128xf32>
    %cst_64 = arith.constant 5.000000e-01 : f32
    %151 = vector.broadcast %cst_64 : f32 to vector<8x128xf32>
    %152 = arith.mulf %151, %150 : vector<8x128xf32>
    %cst_65 = arith.constant 5.000000e-01 : f32
    %153 = vector.broadcast %cst_65 : f32 to vector<8x128xf32>
    %154 = arith.addf %152, %153 : vector<8x128xf32>
    %155 = vector.extract_strided_slice %138 {offsets = [0, 256], sizes = [8, 128], strides = [1, 1]} : vector<8x512xf32> to vector<8x128xf32>
    %156 = math.tanh %155 : vector<8x128xf32>
    %157 = vector.extract_strided_slice %138 {offsets = [0, 384], sizes = [8, 128], strides = [1, 1]} : vector<8x512xf32> to vector<8x128xf32>
    %cst_66 = arith.constant 5.000000e-01 : f32
    %158 = vector.broadcast %cst_66 : f32 to vector<8x128xf32>
    %159 = arith.mulf %158, %157 : vector<8x128xf32>
    %160 = math.tanh %159 : vector<8x128xf32>
    %cst_67 = arith.constant 5.000000e-01 : f32
    %161 = vector.broadcast %cst_67 : f32 to vector<8x128xf32>
    %162 = arith.mulf %161, %160 : vector<8x128xf32>
    %cst_68 = arith.constant 5.000000e-01 : f32
    %163 = vector.broadcast %cst_68 : f32 to vector<8x128xf32>
    %164 = arith.addf %162, %163 : vector<8x128xf32>
    %165 = arith.mulf %154, %128 : vector<8x128xf32>
    %166 = arith.mulf %146, %156 : vector<8x128xf32>
    %167 = arith.addf %165, %166 : vector<8x128xf32>
    %168 = math.tanh %167 : vector<8x128xf32>
    %169 = arith.mulf %164, %168 : vector<8x128xf32>
    %c4_i32 = arith.constant 4 : i32
    %c8_i32_69 = arith.constant 8 : i32
    %170 = arith.muli %c4_i32, %c8_i32_69 : i32
    %171 = tpu.assume_multiple %170, 8 : i32
    %172 = arith.index_cast %171 : i32 to index
    %c0_70 = arith.constant 0 : index
    %173 = vector.load %arg9[%172, %c0_70] : memref<64x512xf32, #tpu.memory_space<vmem>>, vector<8x512xf32>
    %174 = arith.truncf %169 : vector<8x128xf32> to vector<8x128xbf16>
    %c0_71 = arith.constant 0 : index
    %c0_72 = arith.constant 0 : index
    %175 = vector.load %arg4[%c0_71, %c0_72] : memref<128x512xbf16, #tpu.memory_space<vmem>>, vector<128x512xbf16>
    %cst_73 = arith.constant dense<0.000000e+00> : vector<8x512xf32>
    %176 = tpu.matmul %174, %175, %cst_73 {dimension_numbers = #tpu.dot_dimension_numbers<[1], [0], [0], [1], [0, 0, 1, 1], [], []>} : vector<8x128xbf16>, vector<128x512xbf16>, vector<8x512xf32> -> vector<8x512xf32>
    %177 = arith.addf %173, %176 : vector<8x512xf32>
    %178 = vector.extract_strided_slice %177 {offsets = [0, 0], sizes = [8, 128], strides = [1, 1]} : vector<8x512xf32> to vector<8x128xf32>
    %cst_74 = arith.constant 5.000000e-01 : f32
    %179 = vector.broadcast %cst_74 : f32 to vector<8x128xf32>
    %180 = arith.mulf %179, %178 : vector<8x128xf32>
    %181 = math.tanh %180 : vector<8x128xf32>
    %cst_75 = arith.constant 5.000000e-01 : f32
    %182 = vector.broadcast %cst_75 : f32 to vector<8x128xf32>
    %183 = arith.mulf %182, %181 : vector<8x128xf32>
    %cst_76 = arith.constant 5.000000e-01 : f32
    %184 = vector.broadcast %cst_76 : f32 to vector<8x128xf32>
    %185 = arith.addf %183, %184 : vector<8x128xf32>
    %186 = vector.extract_strided_slice %177 {offsets = [0, 128], sizes = [8, 128], strides = [1, 1]} : vector<8x512xf32> to vector<8x128xf32>
    %cst_77 = arith.constant 5.000000e-01 : f32
    %187 = vector.broadcast %cst_77 : f32 to vector<8x128xf32>
    %188 = arith.mulf %187, %186 : vector<8x128xf32>
    %189 = math.tanh %188 : vector<8x128xf32>
    %cst_78 = arith.constant 5.000000e-01 : f32
    %190 = vector.broadcast %cst_78 : f32 to vector<8x128xf32>
    %191 = arith.mulf %190, %189 : vector<8x128xf32>
    %cst_79 = arith.constant 5.000000e-01 : f32
    %192 = vector.broadcast %cst_79 : f32 to vector<8x128xf32>
    %193 = arith.addf %191, %192 : vector<8x128xf32>
    %194 = vector.extract_strided_slice %177 {offsets = [0, 256], sizes = [8, 128], strides = [1, 1]} : vector<8x512xf32> to vector<8x128xf32>
    %195 = math.tanh %194 : vector<8x128xf32>
    %196 = vector.extract_strided_slice %177 {offsets = [0, 384], sizes = [8, 128], strides = [1, 1]} : vector<8x512xf32> to vector<8x128xf32>
    %cst_80 = arith.constant 5.000000e-01 : f32
    %197 = vector.broadcast %cst_80 : f32 to vector<8x128xf32>
    %198 = arith.mulf %197, %196 : vector<8x128xf32>
    %199 = math.tanh %198 : vector<8x128xf32>
    %cst_81 = arith.constant 5.000000e-01 : f32
    %200 = vector.broadcast %cst_81 : f32 to vector<8x128xf32>
    %201 = arith.mulf %200, %199 : vector<8x128xf32>
    %cst_82 = arith.constant 5.000000e-01 : f32
    %202 = vector.broadcast %cst_82 : f32 to vector<8x128xf32>
    %203 = arith.addf %201, %202 : vector<8x128xf32>
    %204 = arith.mulf %193, %167 : vector<8x128xf32>
    %205 = arith.mulf %185, %195 : vector<8x128xf32>
    %206 = arith.addf %204, %205 : vector<8x128xf32>
    %207 = math.tanh %206 : vector<8x128xf32>
    %208 = arith.mulf %203, %207 : vector<8x128xf32>
    %c5_i32 = arith.constant 5 : i32
    %c8_i32_83 = arith.constant 8 : i32
    %209 = arith.muli %c5_i32, %c8_i32_83 : i32
    %210 = tpu.assume_multiple %209, 8 : i32
    %211 = arith.index_cast %210 : i32 to index
    %c0_84 = arith.constant 0 : index
    %212 = vector.load %arg9[%211, %c0_84] : memref<64x512xf32, #tpu.memory_space<vmem>>, vector<8x512xf32>
    %213 = arith.truncf %208 : vector<8x128xf32> to vector<8x128xbf16>
    %c0_85 = arith.constant 0 : index
    %c0_86 = arith.constant 0 : index
    %214 = vector.load %arg4[%c0_85, %c0_86] : memref<128x512xbf16, #tpu.memory_space<vmem>>, vector<128x512xbf16>
    %cst_87 = arith.constant dense<0.000000e+00> : vector<8x512xf32>
    %215 = tpu.matmul %213, %214, %cst_87 {dimension_numbers = #tpu.dot_dimension_numbers<[1], [0], [0], [1], [0, 0, 1, 1], [], []>} : vector<8x128xbf16>, vector<128x512xbf16>, vector<8x512xf32> -> vector<8x512xf32>
    %216 = arith.addf %212, %215 : vector<8x512xf32>
    %217 = vector.extract_strided_slice %216 {offsets = [0, 0], sizes = [8, 128], strides = [1, 1]} : vector<8x512xf32> to vector<8x128xf32>
    %cst_88 = arith.constant 5.000000e-01 : f32
    %218 = vector.broadcast %cst_88 : f32 to vector<8x128xf32>
    %219 = arith.mulf %218, %217 : vector<8x128xf32>
    %220 = math.tanh %219 : vector<8x128xf32>
    %cst_89 = arith.constant 5.000000e-01 : f32
    %221 = vector.broadcast %cst_89 : f32 to vector<8x128xf32>
    %222 = arith.mulf %221, %220 : vector<8x128xf32>
    %cst_90 = arith.constant 5.000000e-01 : f32
    %223 = vector.broadcast %cst_90 : f32 to vector<8x128xf32>
    %224 = arith.addf %222, %223 : vector<8x128xf32>
    %225 = vector.extract_strided_slice %216 {offsets = [0, 128], sizes = [8, 128], strides = [1, 1]} : vector<8x512xf32> to vector<8x128xf32>
    %cst_91 = arith.constant 5.000000e-01 : f32
    %226 = vector.broadcast %cst_91 : f32 to vector<8x128xf32>
    %227 = arith.mulf %226, %225 : vector<8x128xf32>
    %228 = math.tanh %227 : vector<8x128xf32>
    %cst_92 = arith.constant 5.000000e-01 : f32
    %229 = vector.broadcast %cst_92 : f32 to vector<8x128xf32>
    %230 = arith.mulf %229, %228 : vector<8x128xf32>
    %cst_93 = arith.constant 5.000000e-01 : f32
    %231 = vector.broadcast %cst_93 : f32 to vector<8x128xf32>
    %232 = arith.addf %230, %231 : vector<8x128xf32>
    %233 = vector.extract_strided_slice %216 {offsets = [0, 256], sizes = [8, 128], strides = [1, 1]} : vector<8x512xf32> to vector<8x128xf32>
    %234 = math.tanh %233 : vector<8x128xf32>
    %235 = vector.extract_strided_slice %216 {offsets = [0, 384], sizes = [8, 128], strides = [1, 1]} : vector<8x512xf32> to vector<8x128xf32>
    %cst_94 = arith.constant 5.000000e-01 : f32
    %236 = vector.broadcast %cst_94 : f32 to vector<8x128xf32>
    %237 = arith.mulf %236, %235 : vector<8x128xf32>
    %238 = math.tanh %237 : vector<8x128xf32>
    %cst_95 = arith.constant 5.000000e-01 : f32
    %239 = vector.broadcast %cst_95 : f32 to vector<8x128xf32>
    %240 = arith.mulf %239, %238 : vector<8x128xf32>
    %cst_96 = arith.constant 5.000000e-01 : f32
    %241 = vector.broadcast %cst_96 : f32 to vector<8x128xf32>
    %242 = arith.addf %240, %241 : vector<8x128xf32>
    %243 = arith.mulf %232, %206 : vector<8x128xf32>
    %244 = arith.mulf %224, %234 : vector<8x128xf32>
    %245 = arith.addf %243, %244 : vector<8x128xf32>
    %246 = math.tanh %245 : vector<8x128xf32>
    %247 = arith.mulf %242, %246 : vector<8x128xf32>
    %c6_i32 = arith.constant 6 : i32
    %c8_i32_97 = arith.constant 8 : i32
    %248 = arith.muli %c6_i32, %c8_i32_97 : i32
    %249 = tpu.assume_multiple %248, 8 : i32
    %250 = arith.index_cast %249 : i32 to index
    %c0_98 = arith.constant 0 : index
    %251 = vector.load %arg9[%250, %c0_98] : memref<64x512xf32, #tpu.memory_space<vmem>>, vector<8x512xf32>
    %252 = arith.truncf %247 : vector<8x128xf32> to vector<8x128xbf16>
    %c0_99 = arith.constant 0 : index
    %c0_100 = arith.constant 0 : index
    %253 = vector.load %arg4[%c0_99, %c0_100] : memref<128x512xbf16, #tpu.memory_space<vmem>>, vector<128x512xbf16>
    %cst_101 = arith.constant dense<0.000000e+00> : vector<8x512xf32>
    %254 = tpu.matmul %252, %253, %cst_101 {dimension_numbers = #tpu.dot_dimension_numbers<[1], [0], [0], [1], [0, 0, 1, 1], [], []>} : vector<8x128xbf16>, vector<128x512xbf16>, vector<8x512xf32> -> vector<8x512xf32>
    %255 = arith.addf %251, %254 : vector<8x512xf32>
    %256 = vector.extract_strided_slice %255 {offsets = [0, 0], sizes = [8, 128], strides = [1, 1]} : vector<8x512xf32> to vector<8x128xf32>
    %cst_102 = arith.constant 5.000000e-01 : f32
    %257 = vector.broadcast %cst_102 : f32 to vector<8x128xf32>
    %258 = arith.mulf %257, %256 : vector<8x128xf32>
    %259 = math.tanh %258 : vector<8x128xf32>
    %cst_103 = arith.constant 5.000000e-01 : f32
    %260 = vector.broadcast %cst_103 : f32 to vector<8x128xf32>
    %261 = arith.mulf %260, %259 : vector<8x128xf32>
    %cst_104 = arith.constant 5.000000e-01 : f32
    %262 = vector.broadcast %cst_104 : f32 to vector<8x128xf32>
    %263 = arith.addf %261, %262 : vector<8x128xf32>
    %264 = vector.extract_strided_slice %255 {offsets = [0, 128], sizes = [8, 128], strides = [1, 1]} : vector<8x512xf32> to vector<8x128xf32>
    %cst_105 = arith.constant 5.000000e-01 : f32
    %265 = vector.broadcast %cst_105 : f32 to vector<8x128xf32>
    %266 = arith.mulf %265, %264 : vector<8x128xf32>
    %267 = math.tanh %266 : vector<8x128xf32>
    %cst_106 = arith.constant 5.000000e-01 : f32
    %268 = vector.broadcast %cst_106 : f32 to vector<8x128xf32>
    %269 = arith.mulf %268, %267 : vector<8x128xf32>
    %cst_107 = arith.constant 5.000000e-01 : f32
    %270 = vector.broadcast %cst_107 : f32 to vector<8x128xf32>
    %271 = arith.addf %269, %270 : vector<8x128xf32>
    %272 = vector.extract_strided_slice %255 {offsets = [0, 256], sizes = [8, 128], strides = [1, 1]} : vector<8x512xf32> to vector<8x128xf32>
    %273 = math.tanh %272 : vector<8x128xf32>
    %274 = vector.extract_strided_slice %255 {offsets = [0, 384], sizes = [8, 128], strides = [1, 1]} : vector<8x512xf32> to vector<8x128xf32>
    %cst_108 = arith.constant 5.000000e-01 : f32
    %275 = vector.broadcast %cst_108 : f32 to vector<8x128xf32>
    %276 = arith.mulf %275, %274 : vector<8x128xf32>
    %277 = math.tanh %276 : vector<8x128xf32>
    %cst_109 = arith.constant 5.000000e-01 : f32
    %278 = vector.broadcast %cst_109 : f32 to vector<8x128xf32>
    %279 = arith.mulf %278, %277 : vector<8x128xf32>
    %cst_110 = arith.constant 5.000000e-01 : f32
    %280 = vector.broadcast %cst_110 : f32 to vector<8x128xf32>
    %281 = arith.addf %279, %280 : vector<8x128xf32>
    %282 = arith.mulf %271, %245 : vector<8x128xf32>
    %283 = arith.mulf %263, %273 : vector<8x128xf32>
    %284 = arith.addf %282, %283 : vector<8x128xf32>
    %285 = math.tanh %284 : vector<8x128xf32>
    %286 = arith.mulf %281, %285 : vector<8x128xf32>
    %c7_i32 = arith.constant 7 : i32
    %c8_i32_111 = arith.constant 8 : i32
    %287 = arith.muli %c7_i32, %c8_i32_111 : i32
    %288 = tpu.assume_multiple %287, 8 : i32
    %289 = arith.index_cast %288 : i32 to index
    %c0_112 = arith.constant 0 : index
    %290 = vector.load %arg9[%289, %c0_112] : memref<64x512xf32, #tpu.memory_space<vmem>>, vector<8x512xf32>
    %291 = arith.truncf %286 : vector<8x128xf32> to vector<8x128xbf16>
    %c0_113 = arith.constant 0 : index
    %c0_114 = arith.constant 0 : index
    %292 = vector.load %arg4[%c0_113, %c0_114] : memref<128x512xbf16, #tpu.memory_space<vmem>>, vector<128x512xbf16>
    %cst_115 = arith.constant dense<0.000000e+00> : vector<8x512xf32>
    %293 = tpu.matmul %291, %292, %cst_115 {dimension_numbers = #tpu.dot_dimension_numbers<[1], [0], [0], [1], [0, 0, 1, 1], [], []>} : vector<8x128xbf16>, vector<128x512xbf16>, vector<8x512xf32> -> vector<8x512xf32>
    %294 = arith.addf %290, %293 : vector<8x512xf32>
    %295 = vector.extract_strided_slice %294 {offsets = [0, 0], sizes = [8, 128], strides = [1, 1]} : vector<8x512xf32> to vector<8x128xf32>
    %cst_116 = arith.constant 5.000000e-01 : f32
    %296 = vector.broadcast %cst_116 : f32 to vector<8x128xf32>
    %297 = arith.mulf %296, %295 : vector<8x128xf32>
    %298 = math.tanh %297 : vector<8x128xf32>
    %cst_117 = arith.constant 5.000000e-01 : f32
    %299 = vector.broadcast %cst_117 : f32 to vector<8x128xf32>
    %300 = arith.mulf %299, %298 : vector<8x128xf32>
    %cst_118 = arith.constant 5.000000e-01 : f32
    %301 = vector.broadcast %cst_118 : f32 to vector<8x128xf32>
    %302 = arith.addf %300, %301 : vector<8x128xf32>
    %303 = vector.extract_strided_slice %294 {offsets = [0, 128], sizes = [8, 128], strides = [1, 1]} : vector<8x512xf32> to vector<8x128xf32>
    %cst_119 = arith.constant 5.000000e-01 : f32
    %304 = vector.broadcast %cst_119 : f32 to vector<8x128xf32>
    %305 = arith.mulf %304, %303 : vector<8x128xf32>
    %306 = math.tanh %305 : vector<8x128xf32>
    %cst_120 = arith.constant 5.000000e-01 : f32
    %307 = vector.broadcast %cst_120 : f32 to vector<8x128xf32>
    %308 = arith.mulf %307, %306 : vector<8x128xf32>
    %cst_121 = arith.constant 5.000000e-01 : f32
    %309 = vector.broadcast %cst_121 : f32 to vector<8x128xf32>
    %310 = arith.addf %308, %309 : vector<8x128xf32>
    %311 = vector.extract_strided_slice %294 {offsets = [0, 256], sizes = [8, 128], strides = [1, 1]} : vector<8x512xf32> to vector<8x128xf32>
    %312 = math.tanh %311 : vector<8x128xf32>
    %313 = vector.extract_strided_slice %294 {offsets = [0, 384], sizes = [8, 128], strides = [1, 1]} : vector<8x512xf32> to vector<8x128xf32>
    %cst_122 = arith.constant 5.000000e-01 : f32
    %314 = vector.broadcast %cst_122 : f32 to vector<8x128xf32>
    %315 = arith.mulf %314, %313 : vector<8x128xf32>
    %316 = math.tanh %315 : vector<8x128xf32>
    %cst_123 = arith.constant 5.000000e-01 : f32
    %317 = vector.broadcast %cst_123 : f32 to vector<8x128xf32>
    %318 = arith.mulf %317, %316 : vector<8x128xf32>
    %cst_124 = arith.constant 5.000000e-01 : f32
    %319 = vector.broadcast %cst_124 : f32 to vector<8x128xf32>
    %320 = arith.addf %318, %319 : vector<8x128xf32>
    %321 = arith.mulf %310, %284 : vector<8x128xf32>
    %322 = arith.mulf %302, %312 : vector<8x128xf32>
    %323 = arith.addf %321, %322 : vector<8x128xf32>
    %324 = math.tanh %323 : vector<8x128xf32>
    %325 = arith.mulf %320, %324 : vector<8x128xf32>
    %c8_i32_125 = arith.constant 8 : i32
    %c0_126 = arith.constant 0 : index
    %c0_127 = arith.constant 0 : index
    %326 = vector.load %arg10[%c0_126, %c0_127] : memref<8x128xf32, #tpu.memory_space<vmem>>, vector<8x128xf32>
    tpu.vector_store %arg10[%c0_126, %c0_127], %325 {strides = array<i32>} : memref<8x128xf32, #tpu.memory_space<vmem>>, vector<8x128xf32>,
    %c0_128 = arith.constant 0 : index
    %c0_129 = arith.constant 0 : index
    %327 = vector.load %arg11[%c0_128, %c0_129] : memref<8x128xf32, #tpu.memory_space<vmem>>, vector<8x128xf32>
    tpu.vector_store %arg11[%c0_128, %c0_129], %323 {strides = array<i32>} : memref<8x128xf32, #tpu.memory_space<vmem>>, vector<8x128xf32>,
    %c0_i32_130 = arith.constant 0 : i32
    %328 = arith.cmpi eq, %arg1, %c0_i32_130 : i32
    %329 = arith.extui %328 : i1 to i32
    %c0_i32_131 = arith.constant 0 : i32
    %330 = arith.cmpi ne, %329, %c0_i32_131 : i32
    scf.if %330 {
      %331 = arith.truncf %325 : vector<8x128xf32> to vector<8x128xbf16>
      %c0_132 = arith.constant 0 : index
      %c0_133 = arith.constant 0 : index
      %332 = vector.load %arg6[%c0_132, %c0_133] : memref<128x128xbf16, #tpu.memory_space<vmem>>, vector<128x128xbf16>
      %cst_134 = arith.constant dense<0.000000e+00> : vector<8x128xf32>
      %333 = tpu.matmul %331, %332, %cst_134 {dimension_numbers = #tpu.dot_dimension_numbers<[1], [0], [0], [1], [0, 0, 1, 1], [], []>} : vector<8x128xbf16>, vector<128x128xbf16>, vector<8x128xf32> -> vector<8x128xf32>
      %c0_135 = arith.constant 0 : index
      %c0_136 = arith.constant 0 : index
      %334 = vector.load %arg7[%c0_135, %c0_136] : memref<1x128xf32, #tpu.memory_space<vmem>>, vector<1x128xf32>
      %335 = vector.broadcast %334 : vector<1x128xf32> to vector<8x128xf32>
      %336 = arith.addf %333, %335 : vector<8x128xf32>
      %c0_137 = arith.constant 0 : index
      %c0_138 = arith.constant 0 : index
      %337 = vector.load %arg8[%c0_137, %c0_138] : memref<8x128xf32, #tpu.memory_space<vmem>>, vector<8x128xf32>
      tpu.vector_store %arg8[%c0_137, %c0_138], %336 {strides = array<i32>} : memref<8x128xf32, #tpu.memory_space<vmem>>, vector<8x128xf32>,
    } else {
    }
    return
  }
  func.func @transform_0(%arg0: i32, %arg1: i32) -> (i32, i32, i32) {
    %c0_i32 = arith.constant 0 : i32
    %c0_i32_0 = arith.constant 0 : i32
    return %arg1, %arg0, %c0_i32 : i32, i32, i32
  }
  func.func @transform_1(%arg0: i32, %arg1: i32) -> (i32, i32) {
    %c0_i32 = arith.constant 0 : i32
    %c0_i32_0 = arith.constant 0 : i32
    %c0_i32_1 = arith.constant 0 : i32
    return %c0_i32, %c0_i32_0 : i32, i32
  }
  func.func @transform_2(%arg0: i32, %arg1: i32) -> (i32, i32) {
    %c0_i32 = arith.constant 0 : i32
    %c0_i32_0 = arith.constant 0 : i32
    %c0_i32_1 = arith.constant 0 : i32
    return %c0_i32, %c0_i32_0 : i32, i32
  }
  func.func @transform_3(%arg0: i32, %arg1: i32) -> (i32, i32) {
    %c0_i32 = arith.constant 0 : i32
    %c0_i32_0 = arith.constant 0 : i32
    %c0_i32_1 = arith.constant 0 : i32
    return %c0_i32, %c0_i32_0 : i32, i32
  }
  func.func @transform_4(%arg0: i32, %arg1: i32) -> (i32, i32) {
    %c0_i32 = arith.constant 0 : i32
    %c0_i32_0 = arith.constant 0 : i32
    %c0_i32_1 = arith.constant 0 : i32
    return %c0_i32, %c0_i32_0 : i32, i32
  }
  func.func @transform_5(%arg0: i32, %arg1: i32) -> (i32, i32) {
    %c0_i32 = arith.constant 0 : i32
    %c0_i32_0 = arith.constant 0 : i32
    %c0_i32_1 = arith.constant 0 : i32
    return %c0_i32, %c0_i32_0 : i32, i32
  }
  func.func @transform_6(%arg0: i32, %arg1: i32) -> (i32, i32) {
    %c0_i32 = arith.constant 0 : i32
    %c0_i32_0 = arith.constant 0 : i32
    return %arg0, %c0_i32 : i32, i32
  }
}

</mosaic_0001>

<bundles_post_ra>
// kernel: rnn_forward.1
= control target key start
LH: loop header
LB: loop body
LE: loop exit
PB: predicated region body
PF: predicated region fallthrough
CT: control target
= control target key end

     0   :  { %v45_v0 = vlaneseq  ;;  %v1767_v2 = vmov 1966171168   ;;  %v2580_v4 = vmov 0   ;;  %vm103_vm0 = vcmask 1040384   ;;  %s2573_s1 = inlined_call_operand.vmem [shape: bf16[1,512], index: 1, kind: input, shape index: {}]   ;;  %s2574_s2 = inlined_call_operand.vmem [shape: bf16[128,512], index: 2, kind: input, shape index: {}]   ;;  %s2575_s0 = inlined_call_operand.vmem [shape: f32[8,8,1], index: 0, kind: input, shape index: {}]   ;;  %s2576_s3 = inlined_call_operand.vmem [shape: f32[1,512], index: 3, kind: input, shape index: {}]   ;;  %s2577_s4 = inlined_call_operand.vmem [shape: bf16[128,128], index: 4, kind: input, shape index: {}]   ;;  %s2578_s5 = inlined_call_operand.vmem [shape: f32[1,128], index: 5, kind: input, shape index: {}]   ;;  %s2579_s6 = inlined_call_operand.vmem [shape: f32[8,128], index: 6, kind: output, shape index: {}]  }
   0x1   :  { %v1515_v1 = vld.sshfl [vmem:[%s2573_s1] sm:$0x33 pattern:$0x75316420]  ;;  %v75_v3 = vunpack.c.l.s4 %v1767_v2  ;;  %150 = vmatprep.mubr.bf16.mxu0 %v2580_v4  ;;  %223 = vmatprep.mubr.bf16.mxu1 %v2580_v4  ;;  %v105_v9 = vsel %vm103_vm0, 65535, %v2580_v4  ;;  %v31_v13 = vld [vmem:[%s2575_s0 + $0x8] sm:$0xff] }
   0x2   :  { %v1812_v5 = vshrl.u32 %v45_v0, 7  ;;  %v73_v6 = vcombine.high %v1515_v1, %v1515_v1  ;;  %v30_v12 = vld [vmem:[%s2575_s0] sm:$0xff]  ;;  %v1830_v22 = vld [vmem:[%s2574_s2 + $0xec] ss:$16 sps:$4 sm:$0xff]   ;;  %vm90_vm1 = vcmask 7168   ;;  %v32_v28 = vld [vmem:[%s2575_s0 + $0x10] sm:$0xff] }
   0x3   :  { %v76_v7 = vunpack.c.0.s8 %v75_v3  ;;  %v1825_v18 = vld [vmem:[%s2574_s2 + $0xe4] ss:$16 sps:$4 sm:$0xff]   ;;  %v38_v21 = vpack.c.bf16 %v31_v13, %v30_v12  ;;  %v1835_v23 = vld [vmem:[%s2574_s2 + $0xe0] ss:$16 sps:$4 sm:$0xff]   ;;  %v1846_v25 = vld [vmem:[%s2574_s2 + $0xe8] ss:$16 sps:$4 sm:$0xff]  }
   0x4   :  { %v1841_v24 = vld [vmem:[%s2574_s2 + $0xc4] ss:$16 sps:$4 sm:$0xff]   ;;  %v1853_v26 = vld [vmem:[%s2574_s2 + $0xc0] ss:$16 sps:$4 sm:$0xff]   ;;  %v1858_v27 = vld [vmem:[%s2574_s2 + $0xcc] ss:$16 sps:$4 sm:$0xff]  }
   0x5   :  { %v79_v8 = vsub.s32 %v76_v7, %v1812_v5  ;;  %v33_v29 = vld [vmem:[%s2575_s0 + $0x18] sm:$0xff]  ;;  %v1873_v30 = vld [vmem:[%s2574_s2 + $0xa4] ss:$16 sps:$4 sm:$0xff]   ;;  %v1892_v34 = vld [vmem:[%s2574_s2 + $0xa0] ss:$16 sps:$4 sm:$0xff]   ;;  %v1769_v62 = vmov 0.0|0.0  }
   0x6   :  { %v1879_v31 = vld [vmem:[%s2574_s2 + $0xc8] ss:$16 sps:$4 sm:$0xff]   ;;  %v39_v32 = vpack.c.bf16 %v33_v29, %v32_v28  ;;  %v1886_v33 = vld [vmem:[%s2574_s2 + $0xac] ss:$16 sps:$4 sm:$0xff]   ;;  %v1903_v36 = vld [vmem:[%s2574_s2 + $0x84] ss:$16 sps:$4 sm:$0xff]  }
   0x7   :  { %v87_v10 = vrot.slane %v73_v6, %v79_v8  ;;  %v80_v11 = vrot.slane %v1515_v1, %v79_v8  ;;  %v1898_v35 = vld [vmem:[%s2574_s2 + $0xa8] ss:$16 sps:$4 sm:$0xff]   ;;  %v1909_v37 = vld [vmem:[%s2574_s2 + $0x80] ss:$16 sps:$4 sm:$0xff]   ;;  %v1914_v38 = vld [vmem:[%s2574_s2 + $0x8c] ss:$16 sps:$4 sm:$0xff]  }
   0x8   :  { %v34_v39 = vld [vmem:[%s2575_s0 + $0x20] sm:$0xff]  ;;  %v35_v40 = vld [vmem:[%s2575_s0 + $0x28] sm:$0xff]  ;;  %v36_v50 = vld [vmem:[%s2575_s0 + $0x30] sm:$0xff]  ;;  %v47_v63 = vsub.s32 0, %v1812_v5  ;;  %v55_v0 = vsub.s32 2, %v1812_v5  ;;  %v51_v3 = vsub.s32 1, %v1812_v5 }
   0x9   :  { %v110_v14 = vand.u32 %v105_v9, %v87_v10  ;;  %v107_v15 = vand.u32 %v105_v9, %v80_v11  ;;  %v89_v16 = vcombine.high %v87_v10, %v87_v10  ;;  %v88_v17 = vcombine.high %v80_v11, %v80_v11  ;;  %v1931_v41 = vld [vmem:[%s2574_s2 + $0x64] ss:$16 sps:$4 sm:$0xff]   ;;  %v1937_v42 = vld [vmem:[%s2574_s2 + $0x88] ss:$16 sps:$4 sm:$0xff]   ;;  %v1944_v44 = vld [vmem:[%s2574_s2 + $0x6c] ss:$16 sps:$4 sm:$0xff]  }
   0xa   :  { %v40_v43 = vpack.c.bf16 %v35_v40, %v34_v39  ;;  %v1950_v45 = vld [vmem:[%s2574_s2 + $0x60] ss:$16 sps:$4 sm:$0xff]   ;;  %v1956_v46 = vld [vmem:[%s2574_s2 + $0x44] ss:$16 sps:$4 sm:$0xff]   ;;  %v1962_v47 = vld [vmem:[%s2574_s2 + $0x68] ss:$16 sps:$4 sm:$0xff]  }
   0xb   :  { %132 = vmatprep.subr.bf16.mxu0 %v110_v14  ;;  %v116_v19 = vand.u32 %v105_v9, %v89_v16  ;;  %v113_v20 = vand.u32 %v105_v9, %v88_v17  ;;  %v1969_v48 = vld [vmem:[%s2574_s2 + $0x4c] ss:$16 sps:$4 sm:$0xff]   ;;  %v1975_v49 = vld [vmem:[%s2574_s2 + $0x40] ss:$16 sps:$4 sm:$0xff]   ;;  %v1989_v52 = vld [vmem:[%s2574_s2 + $0x24] ss:$16 sps:$4 sm:$0xff]  }
   0xc   :  { %133 = vmatpush1.bf16.msra.mxu0 %v107_v15  ;;  %v37_v51 = vld [vmem:[%s2575_s0 + $0x38] sm:$0xff]  ;;  %v2008_v56 = vld [vmem:[%s2574_s2 + $0x20] ss:$16 sps:$4 sm:$0xff]   ;;  %v2014_v57 = vld [vmem:[%s2574_s2 + $0x4] ss:$16 sps:$4 sm:$0xff]   ;;  %v59_v6 = vsub.s32 3, %v1812_v5 }
   0xd   :  { %205 = vmatprep.subr.bf16.mxu1 %v116_v19  ;;  %498 = vmatprep.subr.bf16.mxu0 %v1825_v18  ;;  %v1995_v53 = vld [vmem:[%s2574_s2 + $0x48] ss:$16 sps:$4 sm:$0xff]   ;;  %v41_v54 = vpack.c.bf16 %v37_v51, %v36_v50  ;;  %v2002_v55 = vld [vmem:[%s2574_s2 + $0x2c] ss:$16 sps:$4 sm:$0xff]   ;;  %v2033_v60 = vld [vmem:[%s2574_s2] ss:$16 sps:$4 sm:$0xff]  }
   0xe   :  { %206 = vmatpush1.bf16.msra.mxu1 %v113_v20  ;;  %v2020_v58 = vld [vmem:[%s2574_s2 + $0x28] ss:$16 sps:$4 sm:$0xff]   ;;  %v2027_v59 = vld [vmem:[%s2574_s2 + $0xc] ss:$16 sps:$4 sm:$0xff]   ;;  %v43_v1 = vld [vmem:[%s2576_s3] sm:$0xf] }
   0xf   :  { %1516 = vmatmul.mubr.msk.bf16.vlgmr.msra.gmra.mxu0 %vm90_vm1, %v38_v21  ;;  %539 = vmatprep.subr.bf16.mxu1 %v1830_v22  ;;  %v2042_v61 = vld [vmem:[%s2574_s2 + $0x8] ss:$16 sps:$4 sm:$0xff]   ;;  %v48_v9 = vrot.slane %v43_v1, %v47_v63  ;;  %v2095_v10 = vrot.slane %v43_v1, %v55_v0  ;;  %v52_v13 = vrot.slane %v43_v1, %v51_v3  ;;  %vm1771_vm2 = vmmov 0  }
  0x10   :  { %499 = vmatpush1.bf16.msra.mxu0 %v1835_v23  ;;  %160 = vmatprep.mubr.bf16.mxu0 %v2580_v4  ;;  %v2101_v15 = vrot.slane %v43_v1, %v59_v6 }
  0x11   :  { %1520 = vmatmul.mubr.msk.bf16.vlgmr.msra.gmra.mxu1 %vm90_vm1, %v38_v21  ;;  %500 = vmatprep.subr.bf16.mxu0 %v1841_v24 }
  0x12   :  { %540 = vmatpush1.bf16.msra.mxu1 %v1846_v25  ;;  %233 = vmatprep.mubr.bf16.mxu1 %v2580_v4 }
  0x13   :  { %541 = vmatprep.subr.bf16.mxu1 %v1858_v27 }
  0x14   :  { %501 = vmatpush1.bf16.msra.mxu0 %v1853_v26 }
  0x15   :  { %502 = vmatprep.subr.bf16.mxu0 %v1873_v30 }
  0x16   :  { %542 = vmatpush1.bf16.msra.mxu1 %v1879_v31 }
  0x17   :  { %1517 = vmatmul.mubr.msk.bf16.gmra.mxu0 %vm90_vm1, %v39_v32  ;;  %543 = vmatprep.subr.bf16.mxu1 %v1886_v33 }
  0x18   :  { %503 = vmatpush1.bf16.msra.mxu0 %v1892_v34  ;;  %170 = vmatprep.mubr.bf16.mxu0 %v2580_v4 }
  0x19   :  { %1521 = vmatmul.mubr.msk.bf16.gmra.mxu1 %vm90_vm1, %v39_v32  ;;  %504 = vmatprep.subr.bf16.mxu0 %v1903_v36 }
  0x1a   :  { %544 = vmatpush1.bf16.msra.mxu1 %v1898_v35  ;;  %243 = vmatprep.mubr.bf16.mxu1 %v2580_v4 }
  0x1b   :  { %545 = vmatprep.subr.bf16.mxu1 %v1914_v38 }
  0x1c   :  { %505 = vmatpush1.bf16.msra.mxu0 %v1909_v37 }
  0x1d   :  { %506 = vmatprep.subr.bf16.mxu0 %v1931_v41 }
  0x1e   :  { %546 = vmatpush1.bf16.msra.mxu1 %v1937_v42 }
  0x1f   :  { %1518 = vmatmul.mubr.msk.bf16.gmra.mxu0 %vm90_vm1, %v40_v43  ;;  %547 = vmatprep.subr.bf16.mxu1 %v1944_v44 }
  0x20   :  { %507 = vmatpush1.bf16.msra.mxu0 %v1950_v45  ;;  %180 = vmatprep.mubr.bf16.mxu0 %v2580_v4 }
  0x21   :  { %1522 = vmatmul.mubr.msk.bf16.gmra.mxu1 %vm90_vm1, %v40_v43  ;;  %508 = vmatprep.subr.bf16.mxu0 %v1956_v46 }
  0x22   :  { %548 = vmatpush1.bf16.msra.mxu1 %v1962_v47  ;;  %253 = vmatprep.mubr.bf16.mxu1 %v2580_v4 }
  0x23   :  { %549 = vmatprep.subr.bf16.mxu1 %v1969_v48 }
  0x24   :  { %509 = vmatpush1.bf16.msra.mxu0 %v1975_v49 }
  0x25   :  { %510 = vmatprep.subr.bf16.mxu0 %v1989_v52 }
  0x26   :  { %550 = vmatpush1.bf16.msra.mxu1 %v1995_v53 }
  0x27   :  { %1519 = vmatmul.mubr.msk.bf16.gmra.mxu0 %vm90_vm1, %v41_v54  ;;  %551 = vmatprep.subr.bf16.mxu1 %v2002_v55 }
  0x28   :  { %511 = vmatpush1.bf16.msra.mxu0 %v2008_v56  ;;  %530 = vmatprep.mubr.bf16.mxu0 %v2580_v4 }
  0x29   :  { %1523 = vmatmul.mubr.msk.bf16.gmra.mxu1 %vm90_vm1, %v41_v54  ;;  %512 = vmatprep.subr.bf16.mxu0 %v2014_v57 }
  0x2a   :  { %552 = vmatpush1.bf16.msra.mxu1 %v2020_v58  ;;  %571 = vmatprep.mubr.bf16.mxu1 %v2580_v4 }
  0x2b   :  { %553 = vmatprep.subr.bf16.mxu1 %v2027_v59 }
  0x2c   :  { %513 = vmatpush1.bf16.msra.mxu0 %v2033_v60 }
  0x2d   :  { %610 = vmatprep.subr.bf16.mxu0 %v1825_v18 }
  0x2e   :  { %554 = vmatpush1.bf16.msra.mxu1 %v2042_v61 }
  0x2f   :  { %531 = vmatmul.mubr.bf16.vlgmr.msra.gmra.mxu0 %v1769_v62  ;;  %651 = vmatprep.subr.bf16.mxu1 %v1830_v22 }
  0x30   :  { %611 = vmatpush1.bf16.msra.mxu0 %v1835_v23  ;;  %642 = vmatprep.mubr.bf16.mxu0 %v2580_v4 }
  0x31   :  { %572 = vmatmul.mubr.bf16.vlgmr.msra.gmra.mxu1 %v1769_v62  ;;  %612 = vmatprep.subr.bf16.mxu0 %v1841_v24 }
  0x32   :  { %652 = vmatpush1.bf16.msra.mxu1 %v1846_v25  ;;  %683 = vmatprep.mubr.bf16.mxu1 %v2580_v4 }
  0x33   :  { %653 = vmatprep.subr.bf16.mxu1 %v1858_v27 }
  0x34   :  { %613 = vmatpush1.bf16.msra.mxu0 %v1853_v26 }
  0x35   :  { %614 = vmatprep.subr.bf16.mxu0 %v1873_v30 }
  0x36   :  { %654 = vmatpush1.bf16.msra.mxu1 %v1879_v31 }
  0x37   :  { %655 = vmatprep.subr.bf16.mxu1 %v1886_v33 }
  0x38   :  { %615 = vmatpush1.bf16.msra.mxu0 %v1892_v34 }
  0x39   :  { %616 = vmatprep.subr.bf16.mxu0 %v1903_v36 }
  0x3a   :  { %656 = vmatpush1.bf16.msra.mxu1 %v1898_v35 }
  0x3b   :  { %657 = vmatprep.subr.bf16.mxu1 %v1914_v38 }
  0x3c   :  { %617 = vmatpush1.bf16.msra.mxu0 %v1909_v37 }
  0x3d   :  { %618 = vmatprep.subr.bf16.mxu0 %v1931_v41 }
  0x3e   :  { %658 = vmatpush1.bf16.msra.mxu1 %v1937_v42 }
  0x3f   :  { %659 = vmatprep.subr.bf16.mxu1 %v1944_v44 }
  0x40   :  { %619 = vmatpush1.bf16.msra.mxu0 %v1950_v45 }
  0x41   :  { %620 = vmatprep.subr.bf16.mxu0 %v1956_v46 }
  0x42   :  { %660 = vmatpush1.bf16.msra.mxu1 %v1962_v47 }
  0x43   :  { %661 = vmatprep.subr.bf16.mxu1 %v1969_v48 }
  0x44   :  { %621 = vmatpush1.bf16.msra.mxu0 %v1975_v49 }
  0x45   :  { %622 = vmatprep.subr.bf16.mxu0 %v1989_v52 }
  0x46   :  { %662 = vmatpush1.bf16.msra.mxu1 %v1995_v53 }
  0x47   :  { %663 = vmatprep.subr.bf16.mxu1 %v2002_v55 }
  0x48   :  { %623 = vmatpush1.bf16.msra.mxu0 %v2008_v56 }
  0x49   :  { %624 = vmatprep.subr.bf16.mxu0 %v2014_v57 }
  0x4a   :  { %664 = vmatpush1.bf16.msra.mxu1 %v2020_v58 }
  0x4b   :  { %665 = vmatprep.subr.bf16.mxu1 %v2027_v59 }
  0x4c   :  { %625 = vmatpush1.bf16.msra.mxu0 %v2033_v60 }
  0x4d   :  { %722 = vmatprep.subr.bf16.mxu0 %v1825_v18 }
  0x4e   :  { %666 = vmatpush1.bf16.msra.mxu1 %v2042_v61 }
  0x4f   :  { %763 = vmatprep.subr.bf16.mxu1 %v1830_v22 }
  0xcf   :  { %v152_v2 = vpop.f32.mrf.mxu0 }
  0xd1   :  { %v2091_v7 = vpop.f32.mrf.mxu0  ;;  %v2093_v8 = vpop.f32.mrf.mxu1 }
  0xd3   :  { %v156_v11 = vpop.f32.mrf.mxu0  ;;  %v2097_v12 = vpop.f32.mrf.mxu1 }
  0xd4   :  { %v2099_v14 = vadd.f32 %v156_v11, %v48_v9 }
  0xd5   :  { %v158_v16 = vpop.f32.mrf.mxu0  ;;  %v229_v17 = vpop.f32.mrf.mxu1 }
  0xd6   :  { %v2103_v19 = vadd.f32 %v158_v16, %v52_v13  ;;  %v2106_v5 = vadd.f32 %v229_v17, %v2095_v10 }
  0xd7   :  { %v162_v20 = vpop.f32.mrf.mxu0  ;;  %v231_v21 = vpop.f32.mrf.mxu1 }
  0xd8   :  { %v2108_v28 = vadd.f32 %v162_v20, %v48_v9  ;;  %v2111_v29 = vadd.f32 %v231_v21, %v2101_v15 }
  0xd9   :  { %v164_v32 = vpop.f32.mrf.mxu0  ;;  %v235_v39 = vpop.f32.mrf.mxu1 }
  0xda   :  { %v2113_v40 = vadd.f32 %v164_v32, %v52_v13  ;;  %v2116_v43 = vadd.f32 %v235_v39, %v2095_v10 }
  0xdb   :  { %v166_v50 = vpop.f32.mrf.mxu0  ;;  %v237_v51 = vpop.f32.mrf.mxu1 }
  0xdc   :  { %v2118_v54 = vadd.f32 %v166_v50, %v48_v9  ;;  %v2121_v62 = vadd.f32 %v237_v51, %v2101_v15 }
  0xdd   :  { %v168_v63 = vpop.f32.mrf.mxu0  ;;  %v239_v0 = vpop.f32.mrf.mxu1 }
  0xde   :  { %2582 = vst [vmem:[#allocation5_spill] sm:$0xff] %v2118_v54  ;;  %v2123_v1 = vadd.f32 %v168_v63, %v52_v13  ;;  %v2126_v3 = vadd.f32 %v239_v0, %v2095_v10 }
  0xdf   :  { %v172_v6 = vpop.f32.mrf.mxu0  ;;  %v241_v11 = vpop.f32.mrf.mxu1 }
  0xe0   :  { %2583 = vst [vmem:[#allocation6_spill] sm:$0xff] %v2123_v1  ;;  %2584 = vst [vmem:[#allocation7_spill] sm:$0xff] %v2126_v3  ;;  %v2128_v16 = vadd.f32 %v172_v6, %v48_v9  ;;  %v2131_v17 = vadd.f32 %v241_v11, %v2101_v15 }
  0xe1   :  { %v174_v20 = vpop.f32.mrf.mxu0  ;;  %v245_v21 = vpop.f32.mrf.mxu1 }
  0xe2   :  { %2585 = vst [vmem:[#allocation8_spill] sm:$0xff] %v2128_v16  ;;  %2586 = vst [vmem:[#allocation9_spill] sm:$0xff] %v2131_v17  ;;  %v2133_v32 = vadd.f32 %v174_v20, %v52_v13  ;;  %v2136_v39 = vadd.f32 %v245_v21, %v2095_v10 }
  0xe3   :  { %v176_v50 = vpop.f32.mrf.mxu0  ;;  %v247_v51 = vpop.f32.mrf.mxu1 }
  0xe4   :  { %2587 = vst [vmem:[#allocation10_spill] sm:$0xff] %v2133_v32  ;;  %2588 = vst [vmem:[#allocation11_spill] sm:$0xff] %v2136_v39  ;;  %v2138_v63 = vadd.f32 %v176_v50, %v48_v9  ;;  %v2141_v0 = vadd.f32 %v247_v51, %v2101_v15 }
  0xe5   :  { %v178_v4 = vpop.f32.mrf.mxu0  ;;  %v249_v6 = vpop.f32.mrf.mxu1 }
  0xe6   :  { %2589 = vst [vmem:[#allocation12_spill] sm:$0xff] %v2138_v63  ;;  %2590 = vst [vmem:[#allocation13_spill] sm:$0xff] %v2141_v0  ;;  %v2143_v16 = vadd.f32 %v178_v4, %v52_v13  ;;  %v2146_v11 = vadd.f32 %v249_v6, %v2095_v10 }
  0xe7   :  { %v182_v17 = vpop.f32.mrf.mxu0  ;;  %v251_v20 = vpop.f32.mrf.mxu1 }
  0xe8   :  { %2591 = vst [vmem:[#allocation14_spill] sm:$0xff] %v2143_v16  ;;  %2592 = vst [vmem:[#allocation15_spill] sm:$0xff] %v2146_v11  ;;  %v2148_v32 = vadd.f32 %v182_v17, %v48_v9  ;;  %v2151_v21 = vadd.f32 %v251_v20, %v2101_v15 }
  0xe9   :  { %v184_v39 = vpop.f32.mrf.mxu0  ;;  %v255_v50 = vpop.f32.mrf.mxu1 }
  0xea   :  { %2593 = vst [vmem:[#allocation16_spill] sm:$0xff] %v2148_v32  ;;  %2594 = vst [vmem:[#allocation17_spill] sm:$0xff] %v2151_v21  ;;  %v2153_v63 = vadd.f32 %v184_v39, %v52_v13  ;;  %v2156_v51 = vadd.f32 %v255_v50, %v2095_v10  ;;  %v153_v32 = vadd.f32 %v152_v2, %v48_v9 }
  0xeb   :  { %v186_v0 = vpop.f32.mrf.mxu0  ;;  %v257_v4 = vpop.f32.mrf.mxu1  ;;  %v155_v50 = vadd.f32 %v2091_v7, %v52_v13  ;;  %v226_v2 = vadd.f32 %v2093_v8, %v2095_v10 }
  0xec   :  { %2595 = vst [vmem:[#allocation18_spill] sm:$0xff] %v2153_v63  ;;  %2596 = vst [vmem:[#allocation19_spill] sm:$0xff] %v2156_v51  ;;  %v2158_v16 = vadd.f32 %v186_v0, %v48_v9  ;;  %v2161_v6 = vadd.f32 %v257_v4, %v2101_v15 }
  0xed   :  { %v188_v11 = vpop.f32.mrf.mxu0  ;;  %v259_v17 = vpop.f32.mrf.mxu1 }
  0xee   :  { %2597 = vst [vmem:[#allocation20_spill] sm:$0xff] %v2158_v16  ;;  %2598 = vst [vmem:[#allocation21_spill] sm:$0xff] %v2161_v6  ;;  %v2163_v3 = vadd.f32 %v188_v11, %v52_v13  ;;  %v2166_v20 = vadd.f32 %v259_v17, %v2095_v10  ;;  %v228_v13 = vadd.f32 %v2097_v12, %v2101_v15 }
  0xef   :  { %v261_v39 = vpop.f32.mrf.mxu1  ;;  %v532_v63 = vpop.f32.mrf.mxu0 }
  0xf0   :  { %2599 = vst [vmem:[#allocation22_spill] sm:$0xff] %v2166_v20  ;;  %v2170_v51 = vadd.f32 %v261_v39, %v2101_v15  ;;  %v580_v0 = vadd.f32 %v532_v63, %v153_v32 }
  0xf1   :  { %v534_v16 = vpop.f32.mrf.mxu0  ;;  %v573_v21 = vpop.f32.mrf.mxu1 }
  0xf2   :  { %v584_v4 = vmul.f32 0.5, %v580_v0  ;;  %v581_v6 = vadd.f32 %v534_v16, %v155_v50  ;;  %v582_v20 = vadd.f32 %v573_v21, %v226_v2 }
  0xf3   :  { %v536_v1 = vpop.f32.mrf.mxu0  ;;  %v575_v54 = vpop.f32.mrf.mxu1 }
  0xf4   :  { %1655 = vtanh.f32 %v584_v4  ;;  %v588_v9 = vmul.f32 0.5, %v581_v6  ;;  %v583_v32 = vadd.f32 %v575_v54, %v228_v13 }
  0xf5   :  { %v537_v11 = vpop.f32.mrf.mxu0  ;;  %v577_v17 = vpop.f32.mrf.mxu1 }
  0xf6   :  { %1657 = vtanh.f32 %v588_v9  ;;  %v593_v63 = vmul.f32 0.5, %v583_v32  ;;  %v2600_v9 = vmov 0  }
  0xf7   :  { %v578_v7 = vpop.f32.mrf.mxu1  ;;  %1659 = vtanh.f32 %v582_v20 }
  0xf8   :  { %1661 = vtanh.f32 %v593_v63 }
 0x101   :  { %v1656_v39 = vpop.eup %1655 }
 0x102   :  { %v586_v16 = vmul.f32 0.5, %v1656_v39 }
 0x103   :  { %v1658_v1 = vpop.eup %1657 }
 0x104   :  { %v587_v50 = vadd.f32 0.5, %v586_v16  ;;  %v590_v0 = vmul.f32 0.5, %v1658_v1  ;;  %v1660_v10 = vpop.eup %1659 }
 0x105   :  { %v1662_v21 = vpop.eup %1661 }
 0x106   :  { %v591_v8 = vadd.f32 0.5, %v590_v0  ;;  %v598_v4 = vmul.f32 %v1660_v10, %v587_v50  ;;  %v595_v2 = vmul.f32 0.5, %v1662_v21 }
 0x108   :  { %v597_v6 = vmul.f32 0.0, %v591_v8  ;;  %v596_v12 = vadd.f32 0.5, %v595_v2 }
 0x10a   :  { %v2176_v11 = vadd.f32 %v598_v4, %v597_v6 }
 0x10c   :  { %1663 = vtanh.f32 %v2176_v11 }
 0x119   :  { %v1664_v15 = vpop.eup %1663 }
 0x11a   :  { %v601_v54 = vmul.f32 %v1664_v15, %v596_v12 }
 0x11c   :  { %v609_v20 = vpack.c.bf16 %v601_v54, %v601_v54 }
 0x11e   :  { %643 = vmatmul.mubr.bf16.vlgmr.msra.gmra.mxu0 %v609_v20  ;;  %684 = vmatmul.mubr.bf16.vlgmr.msra.gmra.mxu1 %v609_v20 }
 0x11f   :  { %723 = vmatpush1.bf16.msra.mxu0 %v1835_v23  ;;  %764 = vmatpush1.bf16.msra.mxu1 %v1846_v25 }
 0x120   :  { %724 = vmatprep.subr.bf16.mxu0 %v1841_v24  ;;  %765 = vmatprep.subr.bf16.mxu1 %v1858_v27 }
 0x121   :  { %754 = vmatprep.mubr.bf16.mxu0 %v2600_v9  ;;  %795 = vmatprep.mubr.bf16.mxu1 %v2600_v9 }
 0x123   :  { %725 = vmatpush1.bf16.msra.mxu0 %v1853_v26  ;;  %766 = vmatpush1.bf16.msra.mxu1 %v1879_v31 }
 0x124   :  { %726 = vmatprep.subr.bf16.mxu0 %v1873_v30  ;;  %767 = vmatprep.subr.bf16.mxu1 %v1886_v33 }
 0x127   :  { %727 = vmatpush1.bf16.msra.mxu0 %v1892_v34  ;;  %768 = vmatpush1.bf16.msra.mxu1 %v1898_v35 }
 0x128   :  { %728 = vmatprep.subr.bf16.mxu0 %v1903_v36  ;;  %769 = vmatprep.subr.bf16.mxu1 %v1914_v38 }
 0x12b   :  { %729 = vmatpush1.bf16.msra.mxu0 %v1909_v37  ;;  %770 = vmatpush1.bf16.msra.mxu1 %v1937_v42 }
 0x12c   :  { %730 = vmatprep.subr.bf16.mxu0 %v1931_v41  ;;  %771 = vmatprep.subr.bf16.mxu1 %v1944_v44 }
 0x12f   :  { %731 = vmatpush1.bf16.msra.mxu0 %v1950_v45  ;;  %772 = vmatpush1.bf16.msra.mxu1 %v1962_v47 }
 0x130   :  { %732 = vmatprep.subr.bf16.mxu0 %v1956_v46  ;;  %773 = vmatprep.subr.bf16.mxu1 %v1969_v48 }
 0x133   :  { %733 = vmatpush1.bf16.msra.mxu0 %v1975_v49  ;;  %774 = vmatpush1.bf16.msra.mxu1 %v1995_v53 }
 0x134   :  { %734 = vmatprep.subr.bf16.mxu0 %v1989_v52  ;;  %775 = vmatprep.subr.bf16.mxu1 %v2002_v55 }
 0x137   :  { %735 = vmatpush1.bf16.msra.mxu0 %v2008_v56  ;;  %776 = vmatpush1.bf16.msra.mxu1 %v2020_v58 }
 0x138   :  { %736 = vmatprep.subr.bf16.mxu0 %v2014_v57  ;;  %777 = vmatprep.subr.bf16.mxu1 %v2027_v59 }
 0x13b   :  { %737 = vmatpush1.bf16.msra.mxu0 %v2033_v60  ;;  %778 = vmatpush1.bf16.msra.mxu1 %v2042_v61 }
 0x13c   :  { %834 = vmatprep.subr.bf16.mxu0 %v1825_v18  ;;  %875 = vmatprep.subr.bf16.mxu1 %v1830_v22 }
 0x1de   :  { %v644_v17 = vpop.f32.mrf.mxu0  ;;  %v685_v7 = vpop.f32.mrf.mxu1 }
 0x1df   :  { %v692_v13 = vadd.f32 %v644_v17, %v2099_v14  ;;  %v694_v0 = vadd.f32 %v685_v7, %v2106_v5 }
 0x1e0   :  { %v646_v32 = vpop.f32.mrf.mxu0  ;;  %v687_v63 = vpop.f32.mrf.mxu1 }
 0x1e1   :  { %v696_v39 = vmul.f32 0.5, %v692_v13  ;;  %v693_v16 = vadd.f32 %v646_v32, %v2103_v19  ;;  %v695_v4 = vadd.f32 %v687_v63, %v2111_v29 }
 0x1e2   :  { %v648_v1 = vpop.f32.mrf.mxu0  ;;  %v689_v50 = vpop.f32.mrf.mxu1 }
 0x1e3   :  { %1665 = vtanh.f32 %v696_v39  ;;  %v700_v8 = vmul.f32 0.5, %v693_v16  ;;  %v705_v21 = vmul.f32 0.5, %v695_v4 }
 0x1e4   :  { %v649_v10 = vpop.f32.mrf.mxu0  ;;  %v690_v6 = vpop.f32.mrf.mxu1 }
 0x1e5   :  { %1667 = vtanh.f32 %v700_v8 }
 0x1e6   :  { %1669 = vtanh.f32 %v694_v0 }
 0x1e7   :  { %1671 = vtanh.f32 %v705_v21 }
 0x1f0   :  { %v1666_v2 = vpop.eup %1665 }
 0x1f1   :  { %v698_v14 = vmul.f32 0.5, %v1666_v2 }
 0x1f2   :  { %v1668_v12 = vpop.eup %1667 }
 0x1f3   :  { %v699_v15 = vadd.f32 0.5, %v698_v14  ;;  %v702_v54 = vmul.f32 0.5, %v1668_v12  ;;  %v1670_v19 = vpop.eup %1669 }
 0x1f4   :  { %v1672_v7 = vpop.eup %1671 }
 0x1f5   :  { %v703_v20 = vadd.f32 0.5, %v702_v54  ;;  %v710_v17 = vmul.f32 %v1670_v19, %v699_v15  ;;  %v707_v32 = vmul.f32 0.5, %v1672_v7 }
 0x1f7   :  { %v709_v13 = vmul.f32 %v703_v20, %v2176_v11  ;;  %v708_v39 = vadd.f32 0.5, %v707_v32 }
 0x1f9   :  { %v2218_v5 = vadd.f32 %v710_v17, %v709_v13 }
 0x1fb   :  { %1673 = vtanh.f32 %v2218_v5 }
 0x208   :  { %v1674_v29 = vpop.eup %1673 }
 0x209   :  { %v713_v63 = vmul.f32 %v1674_v29, %v708_v39 }
 0x20b   :  { %v721_v16 = vpack.c.bf16 %v713_v63, %v713_v63 }
 0x20d   :  { %755 = vmatmul.mubr.bf16.vlgmr.msra.gmra.mxu0 %v721_v16  ;;  %796 = vmatmul.mubr.bf16.vlgmr.msra.gmra.mxu1 %v721_v16 }
 0x20e   :  { %835 = vmatpush1.bf16.msra.mxu0 %v1835_v23  ;;  %876 = vmatpush1.bf16.msra.mxu1 %v1846_v25 }
 0x20f   :  { %836 = vmatprep.subr.bf16.mxu0 %v1841_v24  ;;  %877 = vmatprep.subr.bf16.mxu1 %v1858_v27 }
 0x210   :  { %866 = vmatprep.mubr.bf16.mxu0 %v2600_v9  ;;  %907 = vmatprep.mubr.bf16.mxu1 %v2600_v9 }
 0x212   :  { %837 = vmatpush1.bf16.msra.mxu0 %v1853_v26  ;;  %878 = vmatpush1.bf16.msra.mxu1 %v1879_v31 }
 0x213   :  { %838 = vmatprep.subr.bf16.mxu0 %v1873_v30  ;;  %879 = vmatprep.subr.bf16.mxu1 %v1886_v33 }
 0x216   :  { %839 = vmatpush1.bf16.msra.mxu0 %v1892_v34  ;;  %880 = vmatpush1.bf16.msra.mxu1 %v1898_v35 }
 0x217   :  { %840 = vmatprep.subr.bf16.mxu0 %v1903_v36  ;;  %881 = vmatprep.subr.bf16.mxu1 %v1914_v38 }
 0x21a   :  { %841 = vmatpush1.bf16.msra.mxu0 %v1909_v37  ;;  %882 = vmatpush1.bf16.msra.mxu1 %v1937_v42 }
 0x21b   :  { %842 = vmatprep.subr.bf16.mxu0 %v1931_v41  ;;  %883 = vmatprep.subr.bf16.mxu1 %v1944_v44 }
 0x21e   :  { %843 = vmatpush1.bf16.msra.mxu0 %v1950_v45  ;;  %884 = vmatpush1.bf16.msra.mxu1 %v1962_v47 }
 0x21f   :  { %844 = vmatprep.subr.bf16.mxu0 %v1956_v46  ;;  %885 = vmatprep.subr.bf16.mxu1 %v1969_v48 }
 0x222   :  { %845 = vmatpush1.bf16.msra.mxu0 %v1975_v49  ;;  %886 = vmatpush1.bf16.msra.mxu1 %v1995_v53 }
 0x223   :  { %846 = vmatprep.subr.bf16.mxu0 %v1989_v52  ;;  %887 = vmatprep.subr.bf16.mxu1 %v2002_v55 }
 0x226   :  { %847 = vmatpush1.bf16.msra.mxu0 %v2008_v56  ;;  %888 = vmatpush1.bf16.msra.mxu1 %v2020_v58 }
 0x227   :  { %848 = vmatprep.subr.bf16.mxu0 %v2014_v57  ;;  %889 = vmatprep.subr.bf16.mxu1 %v2027_v59 }
 0x22a   :  { %849 = vmatpush1.bf16.msra.mxu0 %v2033_v60  ;;  %890 = vmatpush1.bf16.msra.mxu1 %v2042_v61 }
 0x22b   :  { %946 = vmatprep.subr.bf16.mxu0 %v1825_v18  ;;  %987 = vmatprep.subr.bf16.mxu1 %v1830_v22 }
 0x2cd   :  { %v756_v11 = vpop.f32.mrf.mxu0  ;;  %v797_v1 = vpop.f32.mrf.mxu1 }
 0x2ce   :  { %v804_v50 = vadd.f32 %v756_v11, %v2108_v28  ;;  %v806_v2 = vadd.f32 %v797_v1, %v2116_v43 }
 0x2cf   :  { %v758_v0 = vpop.f32.mrf.mxu0  ;;  %v799_v8 = vpop.f32.mrf.mxu1 }
 0x2d0   :  { %v808_v10 = vmul.f32 0.5, %v804_v50  ;;  %v805_v6 = vadd.f32 %v758_v0, %v2113_v40  ;;  %v807_v54 = vadd.f32 %v799_v8, %v2121_v62  ;;  %v2601_v8 = vld [vmem:[#allocation5_spill] sm:$0xff] }
 0x2d1   :  { %v760_v4 = vpop.f32.mrf.mxu0  ;;  %v801_v21 = vpop.f32.mrf.mxu1 }
 0x2d2   :  { %1675 = vtanh.f32 %v808_v10  ;;  %v812_v14 = vmul.f32 0.5, %v805_v6  ;;  %v817_v19 = vmul.f32 0.5, %v807_v54  ;;  %v2603_v54 = vld [vmem:[#allocation7_spill] sm:$0xff] }
 0x2d3   :  { %v761_v12 = vpop.f32.mrf.mxu0  ;;  %v802_v15 = vpop.f32.mrf.mxu1 }
 0x2d4   :  { %1677 = vtanh.f32 %v812_v14 }
 0x2d5   :  { %1679 = vtanh.f32 %v806_v2  ;;  %v2602_v2 = vld [vmem:[#allocation6_spill] sm:$0xff] }
 0x2d6   :  { %1681 = vtanh.f32 %v817_v19 }
 0x2df   :  { %v1676_v20 = vpop.eup %1675 }
 0x2e0   :  { %v810_v28 = vmul.f32 0.5, %v1676_v20 }
 0x2e1   :  { %v1678_v17 = vpop.eup %1677 }
 0x2e2   :  { %v811_v13 = vadd.f32 0.5, %v810_v28  ;;  %v814_v7 = vmul.f32 0.5, %v1678_v17  ;;  %v1680_v40 = vpop.eup %1679 }
 0x2e3   :  { %v1682_v63 = vpop.eup %1681 }
 0x2e4   :  { %v815_v32 = vadd.f32 0.5, %v814_v7  ;;  %v822_v39 = vmul.f32 %v1680_v40, %v811_v13  ;;  %v819_v16 = vmul.f32 0.5, %v1682_v63 }
 0x2e6   :  { %v821_v29 = vmul.f32 %v815_v32, %v2218_v5  ;;  %v820_v11 = vadd.f32 0.5, %v819_v16 }
 0x2e8   :  { %v2260_v43 = vadd.f32 %v822_v39, %v821_v29 }
 0x2ea   :  { %1683 = vtanh.f32 %v2260_v43 }
 0x2f7   :  { %v1684_v62 = vpop.eup %1683 }
 0x2f8   :  { %v825_v1 = vmul.f32 %v1684_v62, %v820_v11 }
 0x2fa   :  { %v833_v50 = vpack.c.bf16 %v825_v1, %v825_v1 }
 0x2fc   :  { %867 = vmatmul.mubr.bf16.vlgmr.msra.gmra.mxu0 %v833_v50  ;;  %908 = vmatmul.mubr.bf16.vlgmr.msra.gmra.mxu1 %v833_v50 }
 0x2fd   :  { %947 = vmatpush1.bf16.msra.mxu0 %v1835_v23  ;;  %988 = vmatpush1.bf16.msra.mxu1 %v1846_v25 }
 0x2fe   :  { %948 = vmatprep.subr.bf16.mxu0 %v1841_v24  ;;  %989 = vmatprep.subr.bf16.mxu1 %v1858_v27 }
 0x2ff   :  { %978 = vmatprep.mubr.bf16.mxu0 %v2600_v9  ;;  %1019 = vmatprep.mubr.bf16.mxu1 %v2600_v9 }
 0x301   :  { %949 = vmatpush1.bf16.msra.mxu0 %v1853_v26  ;;  %990 = vmatpush1.bf16.msra.mxu1 %v1879_v31 }
 0x302   :  { %950 = vmatprep.subr.bf16.mxu0 %v1873_v30  ;;  %991 = vmatprep.subr.bf16.mxu1 %v1886_v33 }
 0x305   :  { %951 = vmatpush1.bf16.msra.mxu0 %v1892_v34  ;;  %992 = vmatpush1.bf16.msra.mxu1 %v1898_v35 }
 0x306   :  { %952 = vmatprep.subr.bf16.mxu0 %v1903_v36  ;;  %993 = vmatprep.subr.bf16.mxu1 %v1914_v38 }
 0x309   :  { %953 = vmatpush1.bf16.msra.mxu0 %v1909_v37  ;;  %994 = vmatpush1.bf16.msra.mxu1 %v1937_v42 }
 0x30a   :  { %954 = vmatprep.subr.bf16.mxu0 %v1931_v41  ;;  %995 = vmatprep.subr.bf16.mxu1 %v1944_v44 }
 0x30d   :  { %955 = vmatpush1.bf16.msra.mxu0 %v1950_v45  ;;  %996 = vmatpush1.bf16.msra.mxu1 %v1962_v47 }
 0x30e   :  { %956 = vmatprep.subr.bf16.mxu0 %v1956_v46  ;;  %997 = vmatprep.subr.bf16.mxu1 %v1969_v48 }
 0x311   :  { %957 = vmatpush1.bf16.msra.mxu0 %v1975_v49  ;;  %998 = vmatpush1.bf16.msra.mxu1 %v1995_v53 }
 0x312   :  { %958 = vmatprep.subr.bf16.mxu0 %v1989_v52  ;;  %999 = vmatprep.subr.bf16.mxu1 %v2002_v55 }
 0x315   :  { %959 = vmatpush1.bf16.msra.mxu0 %v2008_v56  ;;  %1000 = vmatpush1.bf16.msra.mxu1 %v2020_v58 }
 0x316   :  { %960 = vmatprep.subr.bf16.mxu0 %v2014_v57  ;;  %1001 = vmatprep.subr.bf16.mxu1 %v2027_v59 }
 0x319   :  { %961 = vmatpush1.bf16.msra.mxu0 %v2033_v60  ;;  %1002 = vmatpush1.bf16.msra.mxu1 %v2042_v61 }
 0x31a   :  { %1058 = vmatprep.subr.bf16.mxu0 %v1825_v18  ;;  %1099 = vmatprep.subr.bf16.mxu1 %v1830_v22  ;;  %v2604_v18 = vld [vmem:[#allocation9_spill] sm:$0xff] }
 0x3bc   :  { %v868_v5 = vpop.f32.mrf.mxu0  ;;  %v909_v0 = vpop.f32.mrf.mxu1 }
 0x3bd   :  { %v916_v10 = vadd.f32 %v868_v5, %v2601_v8  ;;  %v918_v19 = vadd.f32 %v909_v0, %v2603_v54 }
 0x3be   :  { %v870_v6 = vpop.f32.mrf.mxu0  ;;  %v911_v4 = vpop.f32.mrf.mxu1 }
 0x3bf   :  { %v920_v21 = vmul.f32 0.5, %v916_v10  ;;  %v917_v14 = vadd.f32 %v870_v6, %v2602_v2  ;;  %v919_v22 = vadd.f32 %v911_v4, %v2604_v18 }
 0x3c0   :  { %v872_v12 = vpop.f32.mrf.mxu0  ;;  %v913_v15 = vpop.f32.mrf.mxu1 }
 0x3c1   :  { %1685 = vtanh.f32 %v920_v21  ;;  %v924_v20 = vmul.f32 0.5, %v917_v14  ;;  %v929_v13 = vmul.f32 0.5, %v919_v22  ;;  %v2608_v12 = vld [vmem:[#allocation13_spill] sm:$0xff] }
 0x3c2   :  { %v873_v28 = vpop.f32.mrf.mxu0  ;;  %v914_v17 = vpop.f32.mrf.mxu1 }
 0x3c3   :  { %1687 = vtanh.f32 %v924_v20 }
 0x3c4   :  { %1689 = vtanh.f32 %v918_v19 }
 0x3c5   :  { %1691 = vtanh.f32 %v929_v13 }
 0x3ce   :  { %v1686_v7 = vpop.eup %1685 }
 0x3cf   :  { %v922_v40 = vmul.f32 0.5, %v1686_v7 }
 0x3d0   :  { %v1688_v32 = vpop.eup %1687 }
 0x3d1   :  { %v923_v39 = vadd.f32 0.5, %v922_v40  ;;  %v926_v29 = vmul.f32 0.5, %v1688_v32  ;;  %v1690_v63 = vpop.eup %1689 }
 0x3d2   :  { %v1692_v50 = vpop.eup %1691 }
 0x3d3   :  { %v927_v16 = vadd.f32 0.5, %v926_v29  ;;  %v934_v11 = vmul.f32 %v1690_v63, %v923_v39  ;;  %v931_v5 = vmul.f32 0.5, %v1692_v50  ;;  %v2360_v50 = vld [vmem:[%s2574_s2 + $0xe0] ss:$16 sps:$4 sm:$0xff]  }
 0x3d5   :  { %v933_v62 = vmul.f32 %v927_v16, %v2260_v43  ;;  %v932_v0 = vadd.f32 0.5, %v931_v5  ;;  %v2607_v43 = vld [vmem:[#allocation11_spill] sm:$0xff] }
 0x3d6   :  { %v2372_v5 = vld [vmem:[%s2574_s2 + $0xc4] ss:$16 sps:$4 sm:$0xff]  }
 0x3d7   :  { %v2302_v1 = vadd.f32 %v934_v11, %v933_v62 }
 0x3d9   :  { %1693 = vtanh.f32 %v2302_v1 }
 0x3e6   :  { %v1694_v8 = vpop.eup %1693 }
 0x3e7   :  { %v937_v10 = vmul.f32 %v1694_v8, %v932_v0  ;;  %v2378_v0 = vld [vmem:[%s2574_s2 + $0xcc] ss:$16 sps:$4 sm:$0xff]   ;;  %v2386_v8 = vld [vmem:[%s2574_s2 + $0xc0] ss:$16 sps:$4 sm:$0xff]  }
 0x3e9   :  { %v945_v6 = vpack.c.bf16 %v937_v10, %v937_v10  ;;  %v2392_v10 = vld [vmem:[%s2574_s2 + $0xc8] ss:$16 sps:$4 sm:$0xff]  }
 0x3eb   :  { %979 = vmatmul.mubr.bf16.vlgmr.msra.gmra.mxu0 %v945_v6  ;;  %1020 = vmatmul.mubr.bf16.vlgmr.msra.gmra.mxu1 %v945_v6  ;;  %v2398_v6 = vld [vmem:[%s2574_s2 + $0xa4] ss:$16 sps:$4 sm:$0xff]  }
 0x3ec   :  { %1059 = vmatpush1.bf16.msra.mxu0 %v1835_v23  ;;  %1100 = vmatpush1.bf16.msra.mxu1 %v1846_v25  ;;  %v2340_v23 = vld [vmem:[%s2574_s2 + $0xe4] ss:$16 sps:$4 sm:$0xff]  }
 0x3ed   :  { %1060 = vmatprep.subr.bf16.mxu0 %v1841_v24  ;;  %1101 = vmatprep.subr.bf16.mxu1 %v1858_v27  ;;  %v2346_v24 = vld [vmem:[%s2574_s2 + $0xec] ss:$16 sps:$4 sm:$0xff]  }
 0x3ee   :  { %1090 = vmatprep.mubr.bf16.mxu0 %v2600_v9  ;;  %1131 = vmatprep.mubr.bf16.mxu1 %v2600_v9  ;;  %v2605_v27 = vld [vmem:[#allocation8_spill] sm:$0xff] }
 0x3f0   :  { %1061 = vmatpush1.bf16.msra.mxu0 %v1853_v26  ;;  %1102 = vmatpush1.bf16.msra.mxu1 %v1879_v31 }
 0x3f1   :  { %1062 = vmatprep.subr.bf16.mxu0 %v1873_v30  ;;  %1103 = vmatprep.subr.bf16.mxu1 %v1886_v33 }
 0x3f4   :  { %1063 = vmatpush1.bf16.msra.mxu0 %v1892_v34  ;;  %1104 = vmatpush1.bf16.msra.mxu1 %v1898_v35  ;;  %v2606_v35 = vld [vmem:[#allocation10_spill] sm:$0xff] }
 0x3f5   :  { %1064 = vmatprep.subr.bf16.mxu0 %v1903_v36  ;;  %1105 = vmatprep.subr.bf16.mxu1 %v1914_v38 }
 0x3f8   :  { %1065 = vmatpush1.bf16.msra.mxu0 %v1909_v37  ;;  %1106 = vmatpush1.bf16.msra.mxu1 %v1937_v42 }
 0x3f9   :  { %1066 = vmatprep.subr.bf16.mxu0 %v1931_v41  ;;  %1107 = vmatprep.subr.bf16.mxu1 %v1944_v44 }
 0x3fc   :  { %1067 = vmatpush1.bf16.msra.mxu0 %v1950_v45  ;;  %1108 = vmatpush1.bf16.msra.mxu1 %v1962_v47 }
 0x3fd   :  { %1068 = vmatprep.subr.bf16.mxu0 %v1956_v46  ;;  %1109 = vmatprep.subr.bf16.mxu1 %v1969_v48 }
 0x400   :  { %1069 = vmatpush1.bf16.msra.mxu0 %v1975_v49  ;;  %1110 = vmatpush1.bf16.msra.mxu1 %v1995_v53 }
 0x401   :  { %1070 = vmatprep.subr.bf16.mxu0 %v1989_v52  ;;  %1111 = vmatprep.subr.bf16.mxu1 %v2002_v55 }
 0x404   :  { %1071 = vmatpush1.bf16.msra.mxu0 %v2008_v56  ;;  %1112 = vmatpush1.bf16.msra.mxu1 %v2020_v58 }
 0x405   :  { %1072 = vmatprep.subr.bf16.mxu0 %v2014_v57  ;;  %1113 = vmatprep.subr.bf16.mxu1 %v2027_v59 }
 0x408   :  { %1073 = vmatpush1.bf16.msra.mxu0 %v2033_v60  ;;  %1114 = vmatpush1.bf16.msra.mxu1 %v2042_v61 }
 0x409   :  { %1170 = vmatprep.subr.bf16.mxu0 %v2340_v23  ;;  %1211 = vmatprep.subr.bf16.mxu1 %v2346_v24 }
 0x4ab   :  { %v980_v25 = vpop.f32.mrf.mxu0  ;;  %v1021_v26 = vpop.f32.mrf.mxu1 }
 0x4ac   :  { %v1028_v30 = vadd.f32 %v980_v25, %v2605_v27  ;;  %v1030_v4 = vadd.f32 %v1021_v26, %v2607_v43  ;;  %v2404_v25 = vld [vmem:[%s2574_s2 + $0xac] ss:$16 sps:$4 sm:$0xff]   ;;  %v2410_v26 = vld [vmem:[%s2574_s2 + $0xa0] ss:$16 sps:$4 sm:$0xff]   ;;  %v2416_v27 = vld [vmem:[%s2574_s2 + $0xa8] ss:$16 sps:$4 sm:$0xff]  }
 0x4ad   :  { %v982_v31 = vpop.f32.mrf.mxu0  ;;  %v1023_v33 = vpop.f32.mrf.mxu1 }
 0x4ae   :  { %v1032_v34 = vmul.f32 0.5, %v1028_v30  ;;  %v1029_v36 = vadd.f32 %v982_v31, %v2606_v35  ;;  %v1031_v15 = vadd.f32 %v1023_v33, %v2608_v12  ;;  %v2422_v30 = vld [vmem:[%s2574_s2 + $0x84] ss:$16 sps:$4 sm:$0xff]   ;;  %v2428_v31 = vld [vmem:[%s2574_s2 + $0x8c] ss:$16 sps:$4 sm:$0xff]  }
 0x4af   :  { %v984_v37 = vpop.f32.mrf.mxu0  ;;  %v1025_v38 = vpop.f32.mrf.mxu1  ;;  %v2434_v33 = vld [vmem:[%s2574_s2 + $0x80] ss:$16 sps:$4 sm:$0xff]  }
 0x4b0   :  { %1695 = vtanh.f32 %v1032_v34  ;;  %v1036_v21 = vmul.f32 0.5, %v1029_v36  ;;  %v1041_v54 = vmul.f32 0.5, %v1031_v15 }
 0x4b1   :  { %v985_v2 = vpop.f32.mrf.mxu0  ;;  %v1026_v14 = vpop.f32.mrf.mxu1 }
 0x4b2   :  { %1697 = vtanh.f32 %v1036_v21 }
 0x4b3   :  { %1699 = vtanh.f32 %v1030_v4 }
 0x4b4   :  { %1701 = vtanh.f32 %v1041_v54 }
 0x4bd   :  { %v1696_v19 = vpop.eup %1695 }
 0x4be   :  { %v1034_v20 = vmul.f32 0.5, %v1696_v19 }
 0x4bf   :  { %v1698_v28 = vpop.eup %1697 }
 0x4c0   :  { %v1035_v17 = vadd.f32 0.5, %v1034_v20  ;;  %v1038_v18 = vmul.f32 0.5, %v1698_v28  ;;  %v1700_v22 = vpop.eup %1699 }
 0x4c1   :  { %v1702_v39 = vpop.eup %1701 }
 0x4c2   :  { %v1039_v13 = vadd.f32 0.5, %v1038_v18  ;;  %v1046_v7 = vmul.f32 %v1700_v22, %v1035_v17  ;;  %v1043_v29 = vmul.f32 0.5, %v1702_v39  ;;  %v1751_v17 = vld [vmem:[%s2574_s2 + $0x64] ss:$16 sps:$4 sm:$0xff]   ;;  %v1752_v18 = vld [vmem:[%s2574_s2 + $0x6c] ss:$16 sps:$4 sm:$0xff]  }
 0x4c3   :  { %v1753_v22 = vld [vmem:[%s2574_s2 + $0x60] ss:$16 sps:$4 sm:$0xff]   ;;  %v1758_v39 = vld [vmem:[%s2574_s2 + $0x48] ss:$16 sps:$4 sm:$0xff]  }
 0x4c4   :  { %v1045_v40 = vmul.f32 %v1039_v13, %v2302_v1  ;;  %v1044_v63 = vadd.f32 0.5, %v1043_v29  ;;  %v2366_v1 = vld [vmem:[%s2574_s2 + $0xe8] ss:$16 sps:$4 sm:$0xff]   ;;  %v1759_v29 = vld [vmem:[%s2574_s2 + $0x24] ss:$16 sps:$4 sm:$0xff]  }
 0x4c5   :  { %v1754_v13 = vld [vmem:[%s2574_s2 + $0x68] ss:$16 sps:$4 sm:$0xff]  }
 0x4c6   :  { %v2354_v32 = vadd.f32 %v1046_v7, %v1045_v40  ;;  %v1755_v7 = vld [vmem:[%s2574_s2 + $0x44] ss:$16 sps:$4 sm:$0xff]   ;;  %v1756_v40 = vld [vmem:[%s2574_s2 + $0x4c] ss:$16 sps:$4 sm:$0xff]  }
 0x4c8   :  { %1703 = vtanh.f32 %v2354_v32 }
 0x4d5   :  { %v1704_v16 = vpop.eup %1703 }
 0x4d6   :  { %v1049_v11 = vmul.f32 %v1704_v16, %v1044_v63  ;;  %v1760_v63 = vld [vmem:[%s2574_s2 + $0x2c] ss:$16 sps:$4 sm:$0xff]   ;;  %v1761_v16 = vld [vmem:[%s2574_s2 + $0x20] ss:$16 sps:$4 sm:$0xff]  }
 0x4d8   :  { %v1057_v62 = vpack.c.bf16 %v1049_v11, %v1049_v11  ;;  %v1762_v11 = vld [vmem:[%s2574_s2 + $0x28] ss:$16 sps:$4 sm:$0xff]  }
 0x4da   :  { %1091 = vmatmul.mubr.bf16.vlgmr.msra.gmra.mxu0 %v1057_v62  ;;  %1132 = vmatmul.mubr.bf16.vlgmr.msra.gmra.mxu1 %v1057_v62  ;;  %v1763_v62 = vld [vmem:[%s2574_s2 + $0x4] ss:$16 sps:$4 sm:$0xff]  }
 0x4db   :  { %1171 = vmatpush1.bf16.msra.mxu0 %v2360_v50  ;;  %1212 = vmatpush1.bf16.msra.mxu1 %v2366_v1 }
 0x4dc   :  { %1172 = vmatprep.subr.bf16.mxu0 %v2372_v5  ;;  %1213 = vmatprep.subr.bf16.mxu1 %v2378_v0 }
 0x4dd   :  { %1202 = vmatprep.mubr.bf16.mxu0 %v2600_v9  ;;  %1243 = vmatprep.mubr.bf16.mxu1 %v2600_v9 }
 0x4df   :  { %1173 = vmatpush1.bf16.msra.mxu0 %v2386_v8  ;;  %1214 = vmatpush1.bf16.msra.mxu1 %v2392_v10 }
 0x4e0   :  { %1174 = vmatprep.subr.bf16.mxu0 %v2398_v6  ;;  %1215 = vmatprep.subr.bf16.mxu1 %v2404_v25 }
 0x4e3   :  { %1175 = vmatpush1.bf16.msra.mxu0 %v2410_v26  ;;  %1216 = vmatpush1.bf16.msra.mxu1 %v2416_v27 }
 0x4e4   :  { %1176 = vmatprep.subr.bf16.mxu0 %v2422_v30  ;;  %1217 = vmatprep.subr.bf16.mxu1 %v2428_v31 }
 0x4e7   :  { %1177 = vmatpush1.bf16.msra.mxu0 %v2434_v33  ;;  %1218 = vmatpush1.bf16.msra.mxu1 %v1937_v42 }
 0x4e8   :  { %1178 = vmatprep.subr.bf16.mxu0 %v1931_v41  ;;  %1219 = vmatprep.subr.bf16.mxu1 %v1944_v44  ;;  %v2609_v44 = vld [vmem:[#allocation12_spill] sm:$0xff] }
 0x4eb   :  { %1179 = vmatpush1.bf16.msra.mxu0 %v1950_v45  ;;  %1220 = vmatpush1.bf16.msra.mxu1 %v1962_v47 }
 0x4ec   :  { %1180 = vmatprep.subr.bf16.mxu0 %v1956_v46  ;;  %1221 = vmatprep.subr.bf16.mxu1 %v1969_v48 }
 0x4ef   :  { %1181 = vmatpush1.bf16.msra.mxu0 %v1975_v49  ;;  %1222 = vmatpush1.bf16.msra.mxu1 %v1995_v53  ;;  %v2610_v49 = vld [vmem:[#allocation14_spill] sm:$0xff] }
 0x4f0   :  { %1182 = vmatprep.subr.bf16.mxu0 %v1989_v52  ;;  %1223 = vmatprep.subr.bf16.mxu1 %v2002_v55 }
 0x4f3   :  { %1183 = vmatpush1.bf16.msra.mxu0 %v2008_v56  ;;  %1224 = vmatpush1.bf16.msra.mxu1 %v2020_v58  ;;  %v2611_v56 = vld [vmem:[#allocation15_spill] sm:$0xff] }
 0x4f4   :  { %1184 = vmatprep.subr.bf16.mxu0 %v2014_v57  ;;  %1225 = vmatprep.subr.bf16.mxu1 %v2027_v59 }
 0x4f7   :  { %1185 = vmatpush1.bf16.msra.mxu0 %v2033_v60  ;;  %1226 = vmatpush1.bf16.msra.mxu1 %v2042_v61  ;;  %v2612_v61 = vld [vmem:[#allocation17_spill] sm:$0xff] }
 0x4f8   :  { %1282 = vmatprep.subr.bf16.mxu0 %v2340_v23  ;;  %1323 = vmatprep.subr.bf16.mxu1 %v2346_v24 }
 0x59a   :  { %v1092_v41 = vpop.f32.mrf.mxu0  ;;  %v1133_v42 = vpop.f32.mrf.mxu1 }
 0x59b   :  { %v1140_v45 = vadd.f32 %v1092_v41, %v2609_v44  ;;  %v1142_v57 = vadd.f32 %v1133_v42, %v2611_v56  ;;  %v2615_v42 = vld [vmem:[#allocation19_spill] sm:$0xff] }
 0x59c   :  { %v1094_v46 = vpop.f32.mrf.mxu0  ;;  %v1135_v47 = vpop.f32.mrf.mxu1 }
 0x59d   :  { %v1144_v48 = vmul.f32 0.5, %v1140_v45  ;;  %v1141_v52 = vadd.f32 %v1094_v46, %v2610_v49  ;;  %v1143_v23 = vadd.f32 %v1135_v47, %v2612_v61 }
 0x59e   :  { %v1096_v53 = vpop.f32.mrf.mxu0  ;;  %v1137_v55 = vpop.f32.mrf.mxu1 }
 0x59f   :  { %1705 = vtanh.f32 %v1144_v48  ;;  %v1148_v58 = vmul.f32 0.5, %v1141_v52  ;;  %v1153_v24 = vmul.f32 0.5, %v1143_v23  ;;  %v2616_v48 = vld [vmem:[#allocation21_spill] sm:$0xff] }
 0x5a0   :  { %v1097_v59 = vpop.f32.mrf.mxu0  ;;  %v1138_v60 = vpop.f32.mrf.mxu1 }
 0x5a1   :  { %1707 = vtanh.f32 %v1148_v58 }
 0x5a2   :  { %1709 = vtanh.f32 %v1142_v57 }
 0x5a3   :  { %1711 = vtanh.f32 %v1153_v24 }
 0x5ac   :  { %v1706_v34 = vpop.eup %1705 }
 0x5ad   :  { %v1146_v35 = vmul.f32 0.5, %v1706_v34 }
 0x5ae   :  { %v1708_v36 = vpop.eup %1707 }
 0x5af   :  { %v1147_v37 = vadd.f32 0.5, %v1146_v35  ;;  %v1150_v38 = vmul.f32 0.5, %v1708_v36  ;;  %v1710_v43 = vpop.eup %1709 }
 0x5b0   :  { %v1712_v12 = vpop.eup %1711 }
 0x5b1   :  { %v1151_v4 = vadd.f32 0.5, %v1150_v38  ;;  %v1158_v21 = vmul.f32 %v1710_v43, %v1147_v37  ;;  %v1155_v15 = vmul.f32 0.5, %v1712_v12  ;;  %v1650_v12 = vld [vmem:[%s2577_s4 + $0x20] sm:$0xff]  }
 0x5b3   :  { %v1157_v2 = vmul.f32 %v1151_v4, %v2354_v32  ;;  %v1156_v54 = vadd.f32 0.5, %v1155_v15  ;;  %v1757_v32 = vld [vmem:[%s2574_s2 + $0x40] ss:$16 sps:$4 sm:$0xff]   ;;  %v1647_v4 = vld [vmem:[%s2577_s4 + $0x38] sm:$0xff]  }
 0x5b4   :  { %v1651_v15 = vld [vmem:[%s2577_s4 + $0x18] sm:$0xff]  }
 0x5b5   :  { %v2461_v14 = vadd.f32 %v1158_v21, %v1157_v2  ;;  %v1770_v21 = vmov 0.0   ;;  %v1648_v2 = vld [vmem:[%s2577_s4 + $0x30] sm:$0xff]  }
 0x5b7   :  { %1713 = vtanh.f32 %v2461_v14 }
 0x5c4   :  { %v1714_v19 = vpop.eup %1713 }
 0x5c5   :  { %v1161_v20 = vmul.f32 %v1714_v19, %v1156_v54  ;;  %v1652_v54 = vld [vmem:[%s2577_s4 + $0x10] sm:$0xff]   ;;  %v1653_v19 = vld [vmem:[%s2577_s4 + $0x8] sm:$0xff]  }
 0x5c7   :  { %v1169_v28 = vpack.c.bf16 %v1161_v20, %v1161_v20  ;;  %v1654_v20 = vld [vmem:[%s2577_s4] sm:$0xff]  }
 0x5c9   :  { %1203 = vmatmul.mubr.bf16.vlgmr.msra.gmra.mxu0 %v1169_v28  ;;  %1244 = vmatmul.mubr.bf16.vlgmr.msra.gmra.mxu1 %v1169_v28 }
 0x5ca   :  { %1283 = vmatpush1.bf16.msra.mxu0 %v2360_v50  ;;  %1324 = vmatpush1.bf16.msra.mxu1 %v2366_v1  ;;  %v1764_v50 = vld [vmem:[%s2574_s2 + $0xc] ss:$16 sps:$4 sm:$0xff]   ;;  %v1765_v1 = vld [vmem:[%s2574_s2] ss:$16 sps:$4 sm:$0xff]  }
 0x5cb   :  { %1284 = vmatprep.subr.bf16.mxu0 %v2372_v5  ;;  %1325 = vmatprep.subr.bf16.mxu1 %v2378_v0  ;;  %v1766_v5 = vld [vmem:[%s2574_s2 + $0x8] ss:$16 sps:$4 sm:$0xff]  }
 0x5cc   :  { %1314 = vmatprep.mubr.bf16.mxu0 %v2600_v9  ;;  %1355 = vmatprep.mubr.bf16.mxu1 %v2600_v9  ;;  %v1750_v9 = vld [vmem:[%s2574_s2 + $0x88] ss:$16 sps:$4 sm:$0xff]  }
 0x5ce   :  { %1285 = vmatpush1.bf16.msra.mxu0 %v2386_v8  ;;  %1326 = vmatpush1.bf16.msra.mxu1 %v2392_v10  ;;  %v2613_v10 = vld [vmem:[#allocation16_spill] sm:$0xff] }
 0x5cf   :  { %1286 = vmatprep.subr.bf16.mxu0 %v2398_v6  ;;  %1327 = vmatprep.subr.bf16.mxu1 %v2404_v25 }
 0x5d2   :  { %1287 = vmatpush1.bf16.msra.mxu0 %v2410_v26  ;;  %1328 = vmatpush1.bf16.msra.mxu1 %v2416_v27 }
 0x5d3   :  { %1288 = vmatprep.subr.bf16.mxu0 %v2422_v30  ;;  %1329 = vmatprep.subr.bf16.mxu1 %v2428_v31  ;;  %v2614_v30 = vld [vmem:[#allocation18_spill] sm:$0xff] }
 0x5d6   :  { %1289 = vmatpush1.bf16.msra.mxu0 %v2434_v33  ;;  %1330 = vmatpush1.bf16.msra.mxu1 %v1750_v9 }
 0x5d7   :  { %1290 = vmatprep.subr.bf16.mxu0 %v1751_v17  ;;  %1331 = vmatprep.subr.bf16.mxu1 %v1752_v18  ;;  %v2617_v17 = vld [vmem:[#allocation20_spill] sm:$0xff] }
 0x5da   :  { %1291 = vmatpush1.bf16.msra.mxu0 %v1753_v22  ;;  %1332 = vmatpush1.bf16.msra.mxu1 %v1754_v13 }
 0x5db   :  { %1292 = vmatprep.subr.bf16.mxu0 %v1755_v7  ;;  %1333 = vmatprep.subr.bf16.mxu1 %v1756_v40 }
 0x5de   :  { %1293 = vmatpush1.bf16.msra.mxu0 %v1757_v32  ;;  %1334 = vmatpush1.bf16.msra.mxu1 %v1758_v39 }
 0x5df   :  { %1294 = vmatprep.subr.bf16.mxu0 %v1759_v29  ;;  %1335 = vmatprep.subr.bf16.mxu1 %v1760_v63  ;;  %v2618_v29 = vld [vmem:[#allocation22_spill] sm:$0xff] }
 0x5e2   :  { %1295 = vmatpush1.bf16.msra.mxu0 %v1761_v16  ;;  %1336 = vmatpush1.bf16.msra.mxu1 %v1762_v11 }
 0x5e3   :  { %1296 = vmatprep.subr.bf16.mxu0 %v1763_v62  ;;  %1337 = vmatprep.subr.bf16.mxu1 %v1764_v50 }
 0x5e6   :  { %1297 = vmatpush1.bf16.msra.mxu0 %v1765_v1  ;;  %1338 = vmatpush1.bf16.msra.mxu1 %v1766_v5 }
 0x5e7   :  { %1574 = vmatprep.subr.bf16.mxu0 %v1770_v21 }
 0x689   :  { %v1204_v0 = vpop.f32.mrf.mxu0  ;;  %v1245_v8 = vpop.f32.mrf.mxu1 }
 0x68a   :  { %v1252_v6 = vadd.f32 %v1204_v0, %v2613_v10  ;;  %v1254_v44 = vadd.f32 %v1245_v8, %v2615_v42 }
 0x68b   :  { %v1206_v25 = vpop.f32.mrf.mxu0  ;;  %v1247_v26 = vpop.f32.mrf.mxu1 }
 0x68c   :  { %v1256_v27 = vmul.f32 0.5, %v1252_v6  ;;  %v1253_v31 = vadd.f32 %v1206_v25, %v2614_v30  ;;  %v1255_v49 = vadd.f32 %v1247_v26, %v2616_v48 }
 0x68d   :  { %v1208_v33 = vpop.f32.mrf.mxu0  ;;  %v1249_v41 = vpop.f32.mrf.mxu1 }
 0x68e   :  { %1715 = vtanh.f32 %v1256_v27  ;;  %v1260_v45 = vmul.f32 0.5, %v1253_v31  ;;  %v1265_v52 = vmul.f32 0.5, %v1255_v49 }
 0x68f   :  { %v1209_v46 = vpop.f32.mrf.mxu0  ;;  %v1250_v47 = vpop.f32.mrf.mxu1 }
 0x690   :  { %1717 = vtanh.f32 %v1260_v45  ;;  %v1556_v45 = vld [vmem:[%s2578_s5] ss:$0 sm:$0xff] }
 0x691   :  { %1719 = vtanh.f32 %v1254_v44 }
 0x692   :  { %1721 = vtanh.f32 %v1265_v52 }
 0x69b   :  { %v1716_v53 = vpop.eup %1715 }
 0x69c   :  { %v1258_v55 = vmul.f32 0.5, %v1716_v53 }
 0x69d   :  { %v1718_v56 = vpop.eup %1717 }
 0x69e   :  { %v1259_v57 = vadd.f32 0.5, %v1258_v55  ;;  %v1262_v58 = vmul.f32 0.5, %v1718_v56  ;;  %v1720_v59 = vpop.eup %1719 }
 0x69f   :  { %v1722_v34 = vpop.eup %1721 }
 0x6a0   :  { %v1263_v60 = vadd.f32 0.5, %v1262_v58  ;;  %v1270_v61 = vmul.f32 %v1720_v59, %v1259_v57  ;;  %v1267_v35 = vmul.f32 0.5, %v1722_v34 }
 0x6a2   :  { %v1269_v23 = vmul.f32 %v1263_v60, %v2461_v14  ;;  %v1268_v36 = vadd.f32 0.5, %v1267_v35  ;;  %v1649_v14 = vld [vmem:[%s2577_s4 + $0x28] sm:$0xff]  }
 0x6a4   :  { %v2535_v24 = vadd.f32 %v1270_v61, %v1269_v23 }
 0x6a6   :  { %1723 = vtanh.f32 %v2535_v24 }
 0x6b3   :  { %v1724_v37 = vpop.eup %1723 }
 0x6b4   :  { %v1273_v38 = vmul.f32 %v1724_v37, %v1268_v36 }
 0x6b6   :  { %v1281_v43 = vpack.c.bf16 %v1273_v38, %v1273_v38 }
 0x6b8   :  { %1315 = vmatmul.mubr.bf16.vlgmr.msra.gmra.mxu0 %v1281_v43  ;;  %1356 = vmatmul.mubr.bf16.vlgmr.msra.gmra.mxu1 %v1281_v43 }
 0x6b9   :  { %1575 = vmatpush3.bf16.msra.mxu0 %v1647_v4  ;;  %1590 = vmatprep.mubr.msk.bf16.mxu0 %vm1771_vm2, %v1770_v21 }
 0x6ba   :  { %1576 = vmatprep.subr.bf16.mxu0 %v1770_v21 }
 0x6bd   :  { %1577 = vmatpush3.bf16.msra.mxu0 %v1648_v2 }
 0x6be   :  { %1578 = vmatprep.subr.bf16.mxu0 %v1770_v21 }
 0x6c1   :  { %1579 = vmatpush3.bf16.msra.mxu0 %v1649_v14 }
 0x6c2   :  { %1580 = vmatprep.subr.bf16.mxu0 %v1770_v21 }
 0x6c5   :  { %1581 = vmatpush3.bf16.msra.mxu0 %v1650_v12 }
 0x6c6   :  { %1582 = vmatprep.subr.bf16.mxu0 %v1770_v21 }
 0x6c9   :  { %1583 = vmatpush3.bf16.msra.mxu0 %v1651_v15 }
 0x6ca   :  { %1584 = vmatprep.subr.bf16.mxu0 %v1770_v21 }
 0x6cd   :  { %1585 = vmatpush3.bf16.msra.mxu0 %v1652_v54 }
 0x6ce   :  { %1586 = vmatprep.subr.bf16.mxu0 %v1770_v21 }
 0x6d1   :  { %1587 = vmatpush3.bf16.msra.mxu0 %v1653_v19 }
 0x6d2   :  { %1588 = vmatprep.subr.bf16.mxu0 %v1770_v21 }
 0x6d5   :  { %1589 = vmatpush3.bf16.msra.mxu0 %v1654_v20 }
 0x778   :  { %v1316_v28 = vpop.f32.mrf.mxu0  ;;  %v1357_v9 = vpop.f32.mrf.mxu1 }
 0x779   :  { %v1364_v18 = vadd.f32 %v1316_v28, %v2617_v17  ;;  %v1366_v63 = vadd.f32 %v1357_v9, %v2618_v29 }
 0x77a   :  { %v1318_v22 = vpop.f32.mrf.mxu0  ;;  %v1359_v13 = vpop.f32.mrf.mxu1 }
 0x77b   :  { %v1368_v7 = vmul.f32 0.5, %v1364_v18  ;;  %v1365_v40 = vadd.f32 %v1318_v22, %v2163_v3  ;;  %v1367_v50 = vadd.f32 %v1359_v13, %v2170_v51 }
 0x77c   :  { %v1320_v32 = vpop.f32.mrf.mxu0  ;;  %v1361_v39 = vpop.f32.mrf.mxu1 }
 0x77d   :  { %1725 = vtanh.f32 %v1368_v7  ;;  %v1372_v16 = vmul.f32 0.5, %v1365_v40  ;;  %v1377_v1 = vmul.f32 0.5, %v1367_v50 }
 0x77e   :  { %v1321_v11 = vpop.f32.mrf.mxu0  ;;  %v1362_v62 = vpop.f32.mrf.mxu1 }
 0x77f   :  { %1727 = vtanh.f32 %v1372_v16 }
 0x780   :  { %1729 = vtanh.f32 %v1366_v63 }
 0x781   :  { %1731 = vtanh.f32 %v1377_v1 }
 0x78a   :  { %v1726_v5 = vpop.eup %1725 }
 0x78b   :  { %v1370_v0 = vmul.f32 0.5, %v1726_v5 }
 0x78c   :  { %v1728_v8 = vpop.eup %1727 }
 0x78d   :  { %v1371_v10 = vadd.f32 0.5, %v1370_v0  ;;  %v1374_v6 = vmul.f32 0.5, %v1728_v8  ;;  %v1730_v3 = vpop.eup %1729 }
 0x78e   :  { %v1732_v31 = vpop.eup %1731 }
 0x78f   :  { %v1375_v25 = vadd.f32 0.5, %v1374_v6  ;;  %v1382_v26 = vmul.f32 %v1730_v3, %v1371_v10  ;;  %v1379_v33 = vmul.f32 0.5, %v1732_v31 }
 0x791   :  { %v1381_v27 = vmul.f32 %v1375_v25, %v2535_v24  ;;  %v1380_v41 = vadd.f32 0.5, %v1379_v33 }
 0x793   :  { %v1383_v30 = vadd.f32 %v1382_v26, %v1381_v27 }
 0x795   :  { %1733 = vtanh.f32 %v1383_v30 }
 0x7a2   :  { %v1734_v42 = vpop.eup %1733 }
 0x7a3   :  { %v1385_v44 = vmul.f32 %v1734_v42, %v1380_v41 }
 0x7a5   :  { %v1391_v51 = vpack.c.bf16 %v1385_v44, %v1385_v44 }
 0x7a7   :  { %1591 = vmatmul.mubr.bf16.vlgmr.msra.gmra.mxu0 %v1391_v51 }
 0x867   :  { %v1497_v46 = vpop.f32.mrf.mxu0 }
 0x868   :  { %v1498_v47 = vadd.f32 %v1556_v45, %v1497_v46 }
 0x869   :  { %v1592_v48 = vpop.f32.mrf.mxu0 }
 0x86a   :  { %1503 = vst [vmem:[%s2579_s6] sm:$0xff] %v1498_v47 }
 0x86b   :  { %v1500_v49 = vpop.f32.mrf.mxu0 }
 0x86d   :  { %v1593_v52 = vpop.f32.mrf.mxu0 }

</bundles_post_ra>
